<compile_context>
chip_gen: v6e
topology: v6e:2x2x1
jax: 0.10.0
libtpu: 0.0.40
codegen_flags: <defaults>
</compile_context>

<pallas_src>
import functools

import numpy as np

import jax
import jax.numpy as jnp
from jax import lax
from jax.experimental import pallas as pl
from jax.experimental.pallas import tpu as pltpu

LOG_SIG_MAX = 2.0
LOG_SIG_MIN = -10.0
IN_EPS = 1e-5              # PyTorch nn.InstanceNorm2d default eps
MXU_DTYPE = jnp.bfloat16   # encoder MXU operand dtype (f32 accumulation)


def _round_up(x, m):
    return ((x + m - 1) // m) * m


# ----------------------------- shared in-kernel math --------------------------

def _instance_norm_affine(y, gb):
    # y: (C, HW) f32; gb: (C, 2) = [gamma | beta]. All math stays f32 (v5e guardrail).
    mu = jnp.mean(y, axis=-1, keepdims=True)
    xc = y - mu
    var = jnp.mean(xc * xc, axis=-1, keepdims=True)
    return xc * jax.lax.rsqrt(var + IN_EPS) * gb[:, 0:1] + gb[:, 1:2]


def _select_cols(x, s_ref):
    # x: (C, HWin) f32; s_ref: (k*k, HWin, HWout) 0/1 selection matrices (padding is
    # encoded in the matrices). Returns the patch matrix (k*k*C, HWout), rows (kk, c).
    return jnp.concatenate(
        [jnp.dot(x, s_ref[kk], preferred_element_type=jnp.float32)
         for kk in range(s_ref.shape[0])], axis=0)


# ----------------------------- Pallas kernels --------------------------------

def _conv_in_relu_kernel(cols_ref, w_ref, gb_ref, o_ref):
    # Fused conv (im2col matmul, bf16 operands / f32 acc) + InstanceNorm2d(affine)
    # + ReLU. Conv bias omitted upstream: exactly cancelled by the mean subtraction.
    # Output orientation (Cout, HW): spatial on the lane axis (lane-dense stores).
    y = jnp.dot(w_ref[...], cols_ref[...], preferred_element_type=jnp.float32)
    o_ref[...] = jnp.maximum(_instance_norm_affine(y, gb_ref[...]), 0.0)


def _tail_kernel(x2_ref, h_ref, s3_ref, sz_ref, sr_ref,
                 w3_ref, in3_ref, wg_ref, bg_ref, wc_ref, bc_ref,
                 wm_ref, inm_ref, inl_ref,
                 x3_ref, hnew_ref, mean_ref, logstd_ref):
    # One kernel for everything after conv2:
    #   conv3 + IN + ReLU  ->  ConvGRU step  ->  shared-head dual epilogue.
    # All 3x3 patch extraction is in-kernel via 0/1 selection matmuls; all math f32.
    a = h_ref.shape[0]

    # conv3 (3x3, stride 2, reflection pad) + InstanceNorm + ReLU
    cols3 = _select_cols(x2_ref[...], s3_ref)                         # (9*C2, HW)
    y3 = jnp.dot(w3_ref[...], cols3, preferred_element_type=jnp.float32)
    x3 = jnp.maximum(_instance_norm_affine(y3, in3_ref[...]), 0.0)    # (A, HW)
    x3_ref[...] = x3

    # ConvGRU step (zero-pad convs). Single matmul per conv over the
    # channel-concatenated input (merged channel-split matmuls).
    h = h_ref[...]
    g = jnp.dot(wg_ref[...],
                _select_cols(jnp.concatenate([x3, h], axis=0), sz_ref),
                preferred_element_type=jnp.float32) + bg_ref[...]      # (2A, HW)
    r = jax.nn.sigmoid(g[:a, :])
    z = jax.nn.sigmoid(g[a:, :])
    cand = jnp.dot(wc_ref[...],
                   _select_cols(jnp.concatenate([x3, r * h], axis=0), sz_ref),
                   preferred_element_type=jnp.float32) + bc_ref[...]   # (A, HW)
    h_new = (1.0 - z) * h + z * jnp.tanh(cand)
    hnew_ref[...] = h_new

    # Head: the PyTorch source applies mean_conv (reflection pad) to BOTH branches,
    # so the conv and the shared InstanceNorm statistics are computed once; only the
    # affine + activation epilogues differ (ReLU for mean, tanh+clamp for log_std).
    yh = jnp.dot(wm_ref[...], _select_cols(h_new, sr_ref),
                 preferred_element_type=jnp.float32)
    mu = jnp.mean(yh, axis=-1, keepdims=True)
    xc = yh - mu
    var = jnp.mean(xc * xc, axis=-1, keepdims=True)
    yhat = xc * jax.lax.rsqrt(var + IN_EPS)
    gm = inm_ref[...]
    gl = inl_ref[...]
    mean_ref[...] = jnp.maximum(yhat * gm[:, 0:1] + gm[:, 1:2], 0.0)
    # NOTE: clamp-after-tanh mirrors the PyTorch source (a no-op clamp since tanh
    # output already lies in [LOG_SIG_MIN, LOG_SIG_MAX]).
    logstd_ref[...] = jnp.clip(jnp.tanh(yhat * gl[:, 0:1] + gl[:, 1:2]),
                               LOG_SIG_MIN, LOG_SIG_MAX)


# ----------------------------- kernel wrappers --------------------------------

_ENC_PARAMS = pltpu.CompilerParams(dimension_semantics=("parallel",),
                                   vmem_limit_bytes=32 * 1024 * 1024)
_TAIL_PARAMS = pltpu.CompilerParams(dimension_semantics=("arbitrary",),
                                    vmem_limit_bytes=32 * 1024 * 1024)


def _batched_spec(shape):
    nd = len(shape)
    return pl.BlockSpec((None,) + tuple(shape), lambda i: (i,) + (0,) * nd)


def _bcast_spec(shape):
    nd = len(shape)
    return pl.BlockSpec(tuple(shape), lambda i: (0,) * nd)


def conv_in_relu(cols, wmat, gb):
    n, kp, hw = cols.shape
    cout = wmat.shape[0]
    return pl.pallas_call(
        _conv_in_relu_kernel,
        out_shape=jax.ShapeDtypeStruct((n, cout, hw), jnp.float32),
        grid=(n,),
        in_specs=[_batched_spec((kp, hw)),
                  _bcast_spec(wmat.shape),
                  _bcast_spec(gb.shape)],
        out_specs=_batched_spec((cout, hw)),
        compiler_params=_ENC_PARAMS,
    )(cols, wmat, gb)


def fused_tail(x2, h, s3, sz, sr, p):
    n, c2, hw2 = x2.shape
    _, a, hw = h.shape
    out = jax.ShapeDtypeStruct((n, a, hw), jnp.float32)
    return pl.pallas_call(
        _tail_kernel,
        out_shape=(out, out, out, out),
        grid=(n,),
        in_specs=[
            _batched_spec((c2, hw2)),
            _batched_spec((a, hw)),
            _bcast_spec(s3.shape), _bcast_spec(sz.shape), _bcast_spec(sr.shape),
            _bcast_spec(p["w3"].shape), _bcast_spec(p["in3"].shape),
            _bcast_spec(p["wg"].shape), _bcast_spec(p["bg"].shape),
            _bcast_spec(p["wc"].shape), _bcast_spec(p["bc"].shape),
            _bcast_spec(p["wm"].shape), _bcast_spec(p["inm"].shape),
            _bcast_spec(p["inl"].shape),
        ],
        out_specs=tuple(_batched_spec((a, hw)) for _ in range(4)),
        compiler_params=_TAIL_PARAMS,
    )(x2, h, s3, sz, sr, p["w3"], p["in3"], p["wg"], p["bg"],
      p["wc"], p["bc"], p["wm"], p["inm"], p["inl"])


# --------------------------- im2col glue (XLA, gather-free) -------------------

def im2col(x, *, k, stride, pad, mode, k_pad=None):
    """NCHW -> (N, Kpad, Ho*Wo) bf16 patch matrix (rows: Cin slowest, then kh, kw;
    optionally zero-padded along K). Built from k*k static strided slices — no
    gather / dynamic indexing — with the activation cast to the MXU dtype BEFORE
    the pad so the materialized cols tensor is half-width."""
    n, c, h, w = x.shape
    x = x.astype(MXU_DTYPE)
    if pad > 0:
        x = jnp.pad(x, ((0, 0), (0, 0), (pad, pad), (pad, pad)), mode=mode)
    hp, wp = h + 2 * pad, w + 2 * pad
    ho = (hp - k) // stride + 1
    wo = (wp - k) // stride + 1
    slabs = []
    for kh in range(k):
        for kw in range(k):
            slabs.append(lax.slice(
                x, (0, 0, kh, kw),
                (n, c, kh + (ho - 1) * stride + 1, kw + (wo - 1) * stride + 1),
                (1, 1, stride, stride)))
    cols = jnp.stack(slabs, axis=2).reshape(n, c * k * k, ho * wo)
    if k_pad is not None and k_pad > c * k * k:
        cols = jnp.pad(cols, ((0, 0), (0, k_pad - c * k * k), (0, 0)))
    return cols, ho, wo


# ------------------- in-kernel patch-selection matrices (host) ----------------

def _reflect(i, n):
    if i < 0:
        return -i
    if i >= n:
        return 2 * (n - 1) - i
    return i


@functools.lru_cache(maxsize=None)
def _select_matrices(hin, win, k, stride, pad, mode):
    """(k*k, Hin*Win, Ho*Wo) 0/1 matrices: patch extraction as a right-matmul on the
    channel-flattened image. Padding (zero / PyTorch ReflectionPad2d) is encoded in
    the matrix, so the Pallas kernel never materializes patches or padded images."""
    ho = (hin + 2 * pad - k) // stride + 1
    wo = (win + 2 * pad - k) // stride + 1
    s = np.zeros((k * k, hin * win, ho * wo), np.float32)
    for kh in range(k):
        for kw in range(k):
            for oi in range(ho):
                for oj in range(wo):
                    si = oi * stride + kh - pad
                    sj = oj * stride + kw - pad
                    if mode == "reflect":
                        si, sj = _reflect(si, hin), _reflect(sj, win)
                    elif not (0 <= si < hin and 0 <= sj < win):
                        continue
                    s[kh * k + kw, si * win + sj, oi * wo + oj] = 1.0
    return s, ho, wo


# ------------------------------- parameters -----------------------------------

def init_raw_params(key, num_inputs, action_dim, hidden_dim):
    keys = iter(jax.random.split(key, 40))

    def conv(cin, cout, k):
        w = 0.1 * jax.random.normal(next(keys), (cout, cin, k, k), jnp.float32)
        b = 0.01 * jax.random.normal(next(keys), (cout,), jnp.float32)
        return {"w": w, "b": b}

    def inorm(c):
        g = 1.0 + 0.1 * jax.random.normal(next(keys), (c,), jnp.float32)
        b = 0.1 * jax.random.normal(next(keys), (c,), jnp.float32)
        return {"g": g, "b": b}

    p = {}
    p["conv1"] = conv(num_inputs, hidden_dim, 9);       p["in1"] = inorm(hidden_dim)
    p["conv2"] = conv(hidden_dim, hidden_dim * 2, 3);   p["in2"] = inorm(hidden_dim * 2)
    p["conv3"] = conv(hidden_dim * 2, action_dim, 3);   p["in3"] = inorm(action_dim)
    # ConvGRU cell (1 layer, kernel 3, zero pad 1): gate conv (r,z) + candidate conv
    p["gru_gates"] = conv(2 * action_dim, 2 * action_dim, 3)
    p["gru_cand"] = conv(2 * action_dim, action_dim, 3)
    p["mean_conv"] = conv(action_dim, action_dim, 3);   p["inm"] = inorm(action_dim)
    # log_std_conv exists in __init__ but (as in the PyTorch source) is unused in forward
    p["log_std_conv"] = conv(action_dim, action_dim, 3)
    p["inl"] = inorm(action_dim)
    return p


def prepare_params(raw):
    """Kernel-ready layout. Encoder convs: (Cout, Kpad) bf16 matrices with K padded
    to a multiple of 128 (unmasked MXU operand tiles). Tail convs: f32 matrices
    pre-permuted to the in-kernel (kh, kw, cin) patch-row order. Conv biases of all
    conv+InstanceNorm layers are dropped (exactly cancelled by the mean subtraction);
    the GRU conv biases (no norm) are kept as (Cout, 1) columns."""
    def wmat_pad(cw):
        w = cw.reshape(cw.shape[0], -1)
        kp = _round_up(w.shape[1], 128)
        if kp > w.shape[1]:
            w = jnp.pad(w, ((0, 0), (0, kp - w.shape[1])))
        return w.astype(MXU_DTYPE)

    def wperm(cw):   # (Cout, Cin, k, k) -> (Cout, k*k*Cin), row order (kh, kw, cin)
        return jnp.transpose(cw, (0, 2, 3, 1)).reshape(cw.shape[0], -1).astype(jnp.float32)

    def gb(ino):
        return jnp.stack([ino["g"], ino["b"]], axis=1).astype(jnp.float32)   # (C, 2)

    p = {}
    p["conv1_w"], p["in1"] = wmat_pad(raw["conv1"]["w"]), gb(raw["in1"])
    p["conv2_w"], p["in2"] = wmat_pad(raw["conv2"]["w"]), gb(raw["in2"])
    p["w3"], p["in3"] = wperm(raw["conv3"]["w"]), gb(raw["in3"])
    p["wg"] = wperm(raw["gru_gates"]["w"])
    p["bg"] = raw["gru_gates"]["b"].reshape(-1, 1).astype(jnp.float32)
    p["wc"] = wperm(raw["gru_cand"]["w"])
    p["bc"] = raw["gru_cand"]["b"].reshape(-1, 1).astype(jnp.float32)
    # Head: the PyTorch forward reuses mean_conv for BOTH branches -> one shared matmul.
    # (log_std_conv is intentionally unused, matching the PyTorch source.)
    p["wm"] = wperm(raw["mean_conv"]["w"])
    p["inm"], p["inl"] = gb(raw["inm"]), gb(raw["inl"])
    return p


# --------------------------------- forward -------------------------------------

def gaussian_policy_forward(params, state, hidden_state=None):
    n = state.shape[0]
    enc = [state]

    # encoder: 2 x (reflection-pad conv -> InstanceNorm -> ReLU), fused per layer
    cols, h1, w1 = im2col(state, k=9, stride=1, pad=4, mode="reflect",
                          k_pad=params["conv1_w"].shape[1])
    x1 = conv_in_relu(cols, params["conv1_w"], params["in1"]).reshape(n, -1, h1, w1)
    enc.append(x1)

    cols, h2, w2 = im2col(x1, k=3, stride=2, pad=1, mode="reflect",
                          k_pad=params["conv2_w"].shape[1])
    x2 = conv_in_relu(cols, params["conv2_w"], params["in2"])        # (N, 2*hid, h2*w2)
    enc.append(x2.reshape(n, -1, h2, w2))

    # fused tail: conv3 + IN + ReLU -> ConvGRU step -> shared-head dual epilogue,
    # with all 3x3 patch extraction done in-kernel via 0/1 selection matmuls.
    s3, h3, w3 = _select_matrices(h2, w2, 3, 2, 1, "reflect")        # conv3 (stride 2)
    sz, _, _ = _select_matrices(h3, w3, 3, 1, 1, "zero")             # ConvGRU convs
    sr, _, _ = _select_matrices(h3, w3, 3, 1, 1, "reflect")          # head conv
    a = params["w3"].shape[0]
    hw3 = h3 * w3
    # TODO(synk): exact ConvGRU variant of the repo unavailable; standard cell
    #             (sigmoid r,z gates; tanh candidate on conv([x, r*h]);
    #              h' = (1-z)*h + z*cand) assumed, same as previous versions.
    h_prev = (jnp.zeros((n, a, hw3), jnp.float32) if hidden_state is None
              else hidden_state.reshape(n, a, hw3).astype(jnp.float32))
    x3, h_new, mean, log_std = fused_tail(
        x2, h_prev, jnp.asarray(s3), jnp.asarray(sz), jnp.asarray(sr), params)
    enc.append(x3.reshape(n, a, h3, w3))
    return (mean.reshape(n, a, h3, w3), log_std.reshape(n, a, h3, w3),
            enc, h_new.reshape(n, a, h3, w3))


# ------------------------- pure-JAX reference (checks) -------------------------

def _ref_conv(x, w, b, *, stride, pad, mode, dtype=jnp.float32):
    if pad > 0:
        x = jnp.pad(x, ((0, 0), (0, 0), (pad, pad), (pad, pad)), mode=mode)
    y = lax.conv_general_dilated(
        x.astype(dtype), w.astype(dtype), (stride, stride), "VALID",
        dimension_numbers=("NCHW", "OIHW", "NCHW"),
        preferred_element_type=jnp.float32)
    return y + b.reshape(1, -1, 1, 1)


def _ref_in(x, g, b):
    mu = jnp.mean(x, axis=(2, 3), keepdims=True)
    var = jnp.mean(jnp.square(x - mu), axis=(2, 3), keepdims=True)
    return ((x - mu) * jax.lax.rsqrt(var + IN_EPS)
            * g.reshape(1, -1, 1, 1) + b.reshape(1, -1, 1, 1))


def ref_forward(raw, state, hidden_state=None):
    enc = [state]
    x = jax.nn.relu(_ref_in(_ref_conv(state, raw["conv1"]["w"], raw["conv1"]["b"],
                                      stride=1, pad=4, mode="reflect", dtype=MXU_DTYPE),
                            raw["in1"]["g"], raw["in1"]["b"]))
    enc.append(x)
    x = jax.nn.relu(_ref_in(_ref_conv(x, raw["conv2"]["w"], raw["conv2"]["b"],
                                      stride=2, pad=1, mode="reflect", dtype=MXU_DTYPE),
                            raw["in2"]["g"], raw["in2"]["b"]))
    enc.append(x)
    x = jax.nn.relu(_ref_in(_ref_conv(x, raw["conv3"]["w"], raw["conv3"]["b"],
                                      stride=2, pad=1, mode="reflect"),
                            raw["in3"]["g"], raw["in3"]["b"]))
    enc.append(x)

    a = x.shape[1]
    h_prev = jnp.zeros_like(x) if hidden_state is None else hidden_state
    g = _ref_conv(jnp.concatenate([x, h_prev], axis=1), raw["gru_gates"]["w"],
                  raw["gru_gates"]["b"], stride=1, pad=1, mode="constant")
    r = jax.nn.sigmoid(g[:, :a])
    z = jax.nn.sigmoid(g[:, a:])
    cand = _ref_conv(jnp.concatenate([x, r * h_prev], axis=1), raw["gru_cand"]["w"],
                     raw["gru_cand"]["b"], stride=1, pad=1, mode="constant")
    h_new = (1.0 - z) * h_prev + z * jnp.tanh(cand)

    y = _ref_conv(h_new, raw["mean_conv"]["w"], raw["mean_conv"]["b"],
                  stride=1, pad=1, mode="reflect")
    mean = jax.nn.relu(_ref_in(y, raw["inm"]["g"], raw["inm"]["b"]))
    log_std = jnp.clip(jnp.tanh(_ref_in(y, raw["inl"]["g"], raw["inl"]["b"])),
                       LOG_SIG_MIN, LOG_SIG_MAX)
    return mean, log_std, enc, h_new


# ----------------------------------- main ---------------------------------------

if __name__ == "__main__":
    key = jax.random.PRNGKey(0)
    pkey, xkey = jax.random.split(key)

    N, num_inputs, H, W = 2, 4, 16, 16
    hidden_dim, action_dim = 8, 4

    raw = init_raw_params(pkey, num_inputs, action_dim, hidden_dim)
    kparams = prepare_params(raw)
    state = jax.random.normal(xkey, (N, num_inputs, H, W), jnp.float32)

    fwd = jax.jit(gaussian_policy_forward)
    mean, log_std, enc, h_new = fwd(kparams, state)
    jax.block_until_ready((mean, log_std, h_new))

    # shape / sanity checks
    assert mean.shape == (N, action_dim, 4, 4)
    assert log_std.shape == (N, action_dim, 4, 4)
    assert h_new.shape == (N, action_dim, 4, 4)
    assert len(enc) == 4
    assert enc[1].shape == (N, hidden_dim, 16, 16)
    assert enc[2].shape == (N, 2 * hidden_dim, 8, 8)
    assert enc[3].shape == (N, action_dim, 4, 4)
    assert bool(jnp.all(jnp.isfinite(mean))) and bool(jnp.all(jnp.isfinite(log_std)))
    assert bool(jnp.all(log_std >= LOG_SIG_MIN)) and bool(jnp.all(log_std <= LOG_SIG_MAX))

    # cross-check against a pure-JAX reference (guards the slice-based im2col, the
    # in-kernel selection-matrix patch construction, GRU weight permutation and the
    # shared-head dedup; tolerance sized for bf16 encoder operands).
    r_mean, r_log_std, r_enc, r_h = jax.jit(ref_forward)(raw, state)
    tol = 3e-2
    checks = [(mean, r_mean), (log_std, r_log_std), (h_new, r_h),
              (enc[1], r_enc[1]), (enc[2], r_enc[2]), (enc[3], r_enc[3])]
    for got, want in checks:
        err = float(jnp.max(jnp.abs(got - want)))
        assert err < tol, err

    print("KERNEL_OK")
</pallas_src>

<mosaic_0001>
module attributes {stable_mosaic.version = 11 : i64} {
  func.func @_conv_in_relu_kernel(%arg0: i32, %arg1: memref<1x384x256xbf16, #tpu.memory_space<vmem>>, %arg2: memref<8x384xbf16, #tpu.memory_space<vmem>>, %arg3: memref<8x2xf32, #tpu.memory_space<vmem>>, %arg4: memref<1x8x256xf32, #tpu.memory_space<vmem>>) attributes {dimension_semantics = [#tpu.dimension_semantics<parallel>], iteration_bounds = array<i64: 2>, scalar_prefetch = 0 : i64, scratch_operands = 0 : i64, tpu.core_type = #tpu.core_type<tc>, window_params = [{transform_indices = @transform_0, window_bounds = array<i64: 1, 384, 256>}, {pipeline_mode = #tpu.pipeline_mode<synchronous>, transform_indices = @transform_1, window_bounds = array<i64: 8, 384>}, {pipeline_mode = #tpu.pipeline_mode<synchronous>, transform_indices = @transform_2, window_bounds = array<i64: 8, 2>}, {transform_indices = @transform_3, window_bounds = array<i64: 1, 8, 256>}]} {
    %c0 = arith.constant 0 : index
    %c0_0 = arith.constant 0 : index
    %0 = vector.load %arg2[%c0, %c0_0] : memref<8x384xbf16, #tpu.memory_space<vmem>>, vector<8x384xbf16>
    %c0_1 = arith.constant 0 : index
    %c0_2 = arith.constant 0 : index
    %c0_3 = arith.constant 0 : index
    %1 = vector.load %arg1[%c0_1, %c0_2, %c0_3] : memref<1x384x256xbf16, #tpu.memory_space<vmem>>, vector<1x384x256xbf16>
    %2 = vector.shape_cast %1 : vector<1x384x256xbf16> to vector<384x256xbf16>
    %cst = arith.constant dense<0.000000e+00> : vector<8x256xf32>
    %3 = tpu.matmul %0, %2, %cst {dimension_numbers = #tpu.dot_dimension_numbers<[1], [0], [0], [1], [0, 0, 1, 1], [], []>} : vector<8x384xbf16>, vector<384x256xbf16>, vector<8x256xf32> -> vector<8x256xf32>
    %c0_4 = arith.constant 0 : index
    %c0_5 = arith.constant 0 : index
    %4 = vector.load %arg3[%c0_4, %c0_5] : memref<8x2xf32, #tpu.memory_space<vmem>>, vector<8x2xf32>
    %cst_6 = arith.constant dense<0.000000e+00> : vector<8xf32>
    %5 = vector.multi_reduction <add>, %3, %cst_6 [1] : vector<8x256xf32> to vector<8xf32>
    %6 = vector.shape_cast %5 : vector<8xf32> to vector<8x1xf32>
    %cst_7 = arith.constant 2.560000e+02 : f32
    %7 = vector.broadcast %cst_7 : f32 to vector<8x1xf32>
    %8 = arith.divf %6, %7 : vector<8x1xf32>
    %9 = vector.broadcast %8 : vector<8x1xf32> to vector<8x256xf32>
    %10 = arith.subf %3, %9 : vector<8x256xf32>
    %11 = arith.mulf %10, %10 : vector<8x256xf32>
    %cst_8 = arith.constant dense<0.000000e+00> : vector<8xf32>
    %12 = vector.multi_reduction <add>, %11, %cst_8 [1] : vector<8x256xf32> to vector<8xf32>
    %13 = vector.shape_cast %12 : vector<8xf32> to vector<8x1xf32>
    %cst_9 = arith.constant 2.560000e+02 : f32
    %14 = vector.broadcast %cst_9 : f32 to vector<8x1xf32>
    %15 = arith.divf %13, %14 : vector<8x1xf32>
    %cst_10 = arith.constant 9.99999974E-6 : f32
    %16 = vector.broadcast %cst_10 : f32 to vector<8x1xf32>
    %17 = arith.addf %15, %16 : vector<8x1xf32>
    %18 = math.rsqrt %17 : vector<8x1xf32>
    %19 = vector.broadcast %18 : vector<8x1xf32> to vector<8x256xf32>
    %20 = arith.mulf %10, %19 : vector<8x256xf32>
    %21 = vector.extract_strided_slice %4 {offsets = [0, 0], sizes = [8, 1], strides = [1, 1]} : vector<8x2xf32> to vector<8x1xf32>
    %22 = vector.broadcast %21 : vector<8x1xf32> to vector<8x256xf32>
    %23 = arith.mulf %20, %22 : vector<8x256xf32>
    %24 = vector.extract_strided_slice %4 {offsets = [0, 1], sizes = [8, 1], strides = [1, 1]} : vector<8x2xf32> to vector<8x1xf32>
    %25 = vector.broadcast %24 : vector<8x1xf32> to vector<8x256xf32>
    %26 = arith.addf %23, %25 : vector<8x256xf32>
    %cst_11 = arith.constant 0.000000e+00 : f32
    %27 = vector.broadcast %cst_11 : f32 to vector<8x256xf32>
    %28 = arith.maximumf %26, %27 : vector<8x256xf32>
    %c0_12 = arith.constant 0 : index
    %c0_13 = arith.constant 0 : index
    %c0_14 = arith.constant 0 : index
    %29 = vector.load %arg4[%c0_12, %c0_13, %c0_14] : memref<1x8x256xf32, #tpu.memory_space<vmem>>, vector<1x8x256xf32>
    %30 = vector.shape_cast %29 : vector<1x8x256xf32> to vector<8x256xf32>
    %31 = vector.shape_cast %28 : vector<8x256xf32> to vector<1x8x256xf32>
    tpu.vector_store %arg4[%c0_12, %c0_13, %c0_14], %31 {strides = array<i32>} : memref<1x8x256xf32, #tpu.memory_space<vmem>>, vector<1x8x256xf32>,
    return
  }
  func.func @transform_0(%arg0: i32) -> (i32, i32, i32) {
    %c0_i32 = arith.constant 0 : i32
    %c0_i32_0 = arith.constant 0 : i32
    %c0_i32_1 = arith.constant 0 : i32
    return %arg0, %c0_i32, %c0_i32_0 : i32, i32, i32
  }
  func.func @transform_1(%arg0: i32) -> (i32, i32) {
    %c0_i32 = arith.constant 0 : i32
    %c0_i32_0 = arith.constant 0 : i32
    %c0_i32_1 = arith.constant 0 : i32
    return %c0_i32, %c0_i32_0 : i32, i32
  }
  func.func @transform_2(%arg0: i32) -> (i32, i32) {
    %c0_i32 = arith.constant 0 : i32
    %c0_i32_0 = arith.constant 0 : i32
    %c0_i32_1 = arith.constant 0 : i32
    return %c0_i32, %c0_i32_0 : i32, i32
  }
  func.func @transform_3(%arg0: i32) -> (i32, i32, i32) {
    %c0_i32 = arith.constant 0 : i32
    %c0_i32_0 = arith.constant 0 : i32
    %c0_i32_1 = arith.constant 0 : i32
    return %arg0, %c0_i32, %c0_i32_0 : i32, i32, i32
  }
}

module attributes {stable_mosaic.version = 11 : i64} {
  func.func @_conv_in_relu_kernel(%arg0: i32, %arg1: memref<1x128x64xbf16, #tpu.memory_space<vmem>>, %arg2: memref<16x128xbf16, #tpu.memory_space<vmem>>, %arg3: memref<16x2xf32, #tpu.memory_space<vmem>>, %arg4: memref<1x16x64xf32, #tpu.memory_space<vmem>>) attributes {dimension_semantics = [#tpu.dimension_semantics<parallel>], iteration_bounds = array<i64: 2>, scalar_prefetch = 0 : i64, scratch_operands = 0 : i64, tpu.core_type = #tpu.core_type<tc>, window_params = [{transform_indices = @transform_0, window_bounds = array<i64: 1, 128, 64>}, {pipeline_mode = #tpu.pipeline_mode<synchronous>, transform_indices = @transform_1, window_bounds = array<i64: 16, 128>}, {pipeline_mode = #tpu.pipeline_mode<synchronous>, transform_indices = @transform_2, window_bounds = array<i64: 16, 2>}, {transform_indices = @transform_3, window_bounds = array<i64: 1, 16, 64>}]} {
    %c0 = arith.constant 0 : index
    %c0_0 = arith.constant 0 : index
    %0 = vector.load %arg2[%c0, %c0_0] : memref<16x128xbf16, #tpu.memory_space<vmem>>, vector<16x128xbf16>
    %c0_1 = arith.constant 0 : index
    %c0_2 = arith.constant 0 : index
    %c0_3 = arith.constant 0 : index
    %1 = vector.load %arg1[%c0_1, %c0_2, %c0_3] : memref<1x128x64xbf16, #tpu.memory_space<vmem>>, vector<1x128x64xbf16>
    %2 = vector.shape_cast %1 : vector<1x128x64xbf16> to vector<128x64xbf16>
    %cst = arith.constant dense<0.000000e+00> : vector<16x64xf32>
    %3 = tpu.matmul %0, %2, %cst {dimension_numbers = #tpu.dot_dimension_numbers<[1], [0], [0], [1], [0, 0, 1, 1], [], []>} : vector<16x128xbf16>, vector<128x64xbf16>, vector<16x64xf32> -> vector<16x64xf32>
    %c0_4 = arith.constant 0 : index
    %c0_5 = arith.constant 0 : index
    %4 = vector.load %arg3[%c0_4, %c0_5] : memref<16x2xf32, #tpu.memory_space<vmem>>, vector<16x2xf32>
    %cst_6 = arith.constant dense<0.000000e+00> : vector<16xf32>
    %5 = vector.multi_reduction <add>, %3, %cst_6 [1] : vector<16x64xf32> to vector<16xf32>
    %6 = vector.shape_cast %5 : vector<16xf32> to vector<16x1xf32>
    %cst_7 = arith.constant 6.400000e+01 : f32
    %7 = vector.broadcast %cst_7 : f32 to vector<16x1xf32>
    %8 = arith.divf %6, %7 : vector<16x1xf32>
    %9 = vector.broadcast %8 : vector<16x1xf32> to vector<16x64xf32>
    %10 = arith.subf %3, %9 : vector<16x64xf32>
    %11 = arith.mulf %10, %10 : vector<16x64xf32>
    %cst_8 = arith.constant dense<0.000000e+00> : vector<16xf32>
    %12 = vector.multi_reduction <add>, %11, %cst_8 [1] : vector<16x64xf32> to vector<16xf32>
    %13 = vector.shape_cast %12 : vector<16xf32> to vector<16x1xf32>
    %cst_9 = arith.constant 6.400000e+01 : f32
    %14 = vector.broadcast %cst_9 : f32 to vector<16x1xf32>
    %15 = arith.divf %13, %14 : vector<16x1xf32>
    %cst_10 = arith.constant 9.99999974E-6 : f32
    %16 = vector.broadcast %cst_10 : f32 to vector<16x1xf32>
    %17 = arith.addf %15, %16 : vector<16x1xf32>
    %18 = math.rsqrt %17 : vector<16x1xf32>
    %19 = vector.broadcast %18 : vector<16x1xf32> to vector<16x64xf32>
    %20 = arith.mulf %10, %19 : vector<16x64xf32>
    %21 = vector.extract_strided_slice %4 {offsets = [0, 0], sizes = [16, 1], strides = [1, 1]} : vector<16x2xf32> to vector<16x1xf32>
    %22 = vector.broadcast %21 : vector<16x1xf32> to vector<16x64xf32>
    %23 = arith.mulf %20, %22 : vector<16x64xf32>
    %24 = vector.extract_strided_slice %4 {offsets = [0, 1], sizes = [16, 1], strides = [1, 1]} : vector<16x2xf32> to vector<16x1xf32>
    %25 = vector.broadcast %24 : vector<16x1xf32> to vector<16x64xf32>
    %26 = arith.addf %23, %25 : vector<16x64xf32>
    %cst_11 = arith.constant 0.000000e+00 : f32
    %27 = vector.broadcast %cst_11 : f32 to vector<16x64xf32>
    %28 = arith.maximumf %26, %27 : vector<16x64xf32>
    %c0_12 = arith.constant 0 : index
    %c0_13 = arith.constant 0 : index
    %c0_14 = arith.constant 0 : index
    %29 = vector.load %arg4[%c0_12, %c0_13, %c0_14] : memref<1x16x64xf32, #tpu.memory_space<vmem>>, vector<1x16x64xf32>
    %30 = vector.shape_cast %29 : vector<1x16x64xf32> to vector<16x64xf32>
    %31 = vector.shape_cast %28 : vector<16x64xf32> to vector<1x16x64xf32>
    tpu.vector_store %arg4[%c0_12, %c0_13, %c0_14], %31 {strides = array<i32>} : memref<1x16x64xf32, #tpu.memory_space<vmem>>, vector<1x16x64xf32>,
    return
  }
  func.func @transform_0(%arg0: i32) -> (i32, i32, i32) {
    %c0_i32 = arith.constant 0 : i32
    %c0_i32_0 = arith.constant 0 : i32
    %c0_i32_1 = arith.constant 0 : i32
    return %arg0, %c0_i32, %c0_i32_0 : i32, i32, i32
  }
  func.func @transform_1(%arg0: i32) -> (i32, i32) {
    %c0_i32 = arith.constant 0 : i32
    %c0_i32_0 = arith.constant 0 : i32
    %c0_i32_1 = arith.constant 0 : i32
    return %c0_i32, %c0_i32_0 : i32, i32
  }
  func.func @transform_2(%arg0: i32) -> (i32, i32) {
    %c0_i32 = arith.constant 0 : i32
    %c0_i32_0 = arith.constant 0 : i32
    %c0_i32_1 = arith.constant 0 : i32
    return %c0_i32, %c0_i32_0 : i32, i32
  }
  func.func @transform_3(%arg0: i32) -> (i32, i32, i32) {
    %c0_i32 = arith.constant 0 : i32
    %c0_i32_0 = arith.constant 0 : i32
    %c0_i32_1 = arith.constant 0 : i32
    return %arg0, %c0_i32, %c0_i32_0 : i32, i32, i32
  }
}

module attributes {stable_mosaic.version = 11 : i64} {
  func.func @_tail_kernel(%arg0: i32, %arg1: memref<1x16x64xf32, #tpu.memory_space<vmem>>, %arg2: memref<1x4x16xf32, #tpu.memory_space<vmem>>, %arg3: memref<9x64x16xf32, #tpu.memory_space<vmem>>, %arg4: memref<9x16x16xf32, #tpu.memory_space<vmem>>, %arg5: memref<9x16x16xf32, #tpu.memory_space<vmem>>, %arg6: memref<4x144xf32, #tpu.memory_space<vmem>>, %arg7: memref<4x2xf32, #tpu.memory_space<vmem>>, %arg8: memref<8x72xf32, #tpu.memory_space<vmem>>, %arg9: memref<8x1xf32, #tpu.memory_space<vmem>>, %arg10: memref<4x72xf32, #tpu.memory_space<vmem>>, %arg11: memref<4x1xf32, #tpu.memory_space<vmem>>, %arg12: memref<4x36xf32, #tpu.memory_space<vmem>>, %arg13: memref<4x2xf32, #tpu.memory_space<vmem>>, %arg14: memref<4x2xf32, #tpu.memory_space<vmem>>, %arg15: memref<1x4x16xf32, #tpu.memory_space<vmem>>, %arg16: memref<1x4x16xf32, #tpu.memory_space<vmem>>, %arg17: memref<1x4x16xf32, #tpu.memory_space<vmem>>, %arg18: memref<1x4x16xf32, #tpu.memory_space<vmem>>) attributes {dimension_semantics = [#tpu.dimension_semantics<arbitrary>], iteration_bounds = array<i64: 2>, scalar_prefetch = 0 : i64, scratch_operands = 0 : i64, tpu.core_type = #tpu.core_type<tc>, window_params = [{transform_indices = @transform_0, window_bounds = array<i64: 1, 16, 64>}, {transform_indices = @transform_1, window_bounds = array<i64: 1, 4, 16>}, {pipeline_mode = #tpu.pipeline_mode<synchronous>, transform_indices = @transform_2, window_bounds = array<i64: 9, 64, 16>}, {pipeline_mode = #tpu.pipeline_mode<synchronous>, transform_indices = @transform_3, window_bounds = array<i64: 9, 16, 16>}, {pipeline_mode = #tpu.pipeline_mode<synchronous>, transform_indices = @transform_4, window_bounds = array<i64: 9, 16, 16>}, {pipeline_mode = #tpu.pipeline_mode<synchronous>, transform_indices = @transform_5, window_bounds = array<i64: 4, 144>}, {pipeline_mode = #tpu.pipeline_mode<synchronous>, transform_indices = @transform_6, window_bounds = array<i64: 4, 2>}, {pipeline_mode = #tpu.pipeline_mode<synchronous>, transform_indices = @transform_7, window_bounds = array<i64: 8, 72>}, {pipeline_mode = #tpu.pipeline_mode<synchronous>, transform_indices = @transform_8, window_bounds = array<i64: 8, 1>}, {pipeline_mode = #tpu.pipeline_mode<synchronous>, transform_indices = @transform_9, window_bounds = array<i64: 4, 72>}, {pipeline_mode = #tpu.pipeline_mode<synchronous>, transform_indices = @transform_10, window_bounds = array<i64: 4, 1>}, {pipeline_mode = #tpu.pipeline_mode<synchronous>, transform_indices = @transform_11, window_bounds = array<i64: 4, 36>}, {pipeline_mode = #tpu.pipeline_mode<synchronous>, transform_indices = @transform_12, window_bounds = array<i64: 4, 2>}, {pipeline_mode = #tpu.pipeline_mode<synchronous>, transform_indices = @transform_13, window_bounds = array<i64: 4, 2>}, {transform_indices = @transform_14, window_bounds = array<i64: 1, 4, 16>}, {transform_indices = @transform_15, window_bounds = array<i64: 1, 4, 16>}, {transform_indices = @transform_16, window_bounds = array<i64: 1, 4, 16>}, {transform_indices = @transform_17, window_bounds = array<i64: 1, 4, 16>}]} {
    %c0 = arith.constant 0 : index
    %c0_0 = arith.constant 0 : index
    %c0_1 = arith.constant 0 : index
    %0 = vector.load %arg1[%c0, %c0_0, %c0_1] : memref<1x16x64xf32, #tpu.memory_space<vmem>>, vector<1x16x64xf32>
    %1 = vector.shape_cast %0 : vector<1x16x64xf32> to vector<16x64xf32>
    %c0_2 = arith.constant 0 : index
    %c0_3 = arith.constant 0 : index
    %c0_4 = arith.constant 0 : index
    %2 = vector.load %arg3[%c0_2, %c0_3, %c0_4] : memref<9x64x16xf32, #tpu.memory_space<vmem>>, vector<1x64x16xf32>
    %3 = vector.shape_cast %2 : vector<1x64x16xf32> to vector<64x16xf32>
    %cst = arith.constant dense<0.000000e+00> : vector<16x16xf32>
    %4 = tpu.matmul %1, %3, %cst {dimension_numbers = #tpu.dot_dimension_numbers<[1], [0], [0], [1], [0, 0, 1, 1], [], []>} : vector<16x64xf32>, vector<64x16xf32>, vector<16x16xf32> -> vector<16x16xf32>
    %c1 = arith.constant 1 : index
    %c0_5 = arith.constant 0 : index
    %c0_6 = arith.constant 0 : index
    %5 = vector.load %arg3[%c1, %c0_5, %c0_6] : memref<9x64x16xf32, #tpu.memory_space<vmem>>, vector<1x64x16xf32>
    %6 = vector.shape_cast %5 : vector<1x64x16xf32> to vector<64x16xf32>
    %cst_7 = arith.constant dense<0.000000e+00> : vector<16x16xf32>
    %7 = tpu.matmul %1, %6, %cst_7 {dimension_numbers = #tpu.dot_dimension_numbers<[1], [0], [0], [1], [0, 0, 1, 1], [], []>} : vector<16x64xf32>, vector<64x16xf32>, vector<16x16xf32> -> vector<16x16xf32>
    %c2 = arith.constant 2 : index
    %c0_8 = arith.constant 0 : index
    %c0_9 = arith.constant 0 : index
    %8 = vector.load %arg3[%c2, %c0_8, %c0_9] : memref<9x64x16xf32, #tpu.memory_space<vmem>>, vector<1x64x16xf32>
    %9 = vector.shape_cast %8 : vector<1x64x16xf32> to vector<64x16xf32>
    %cst_10 = arith.constant dense<0.000000e+00> : vector<16x16xf32>
    %10 = tpu.matmul %1, %9, %cst_10 {dimension_numbers = #tpu.dot_dimension_numbers<[1], [0], [0], [1], [0, 0, 1, 1], [], []>} : vector<16x64xf32>, vector<64x16xf32>, vector<16x16xf32> -> vector<16x16xf32>
    %c3 = arith.constant 3 : index
    %c0_11 = arith.constant 0 : index
    %c0_12 = arith.constant 0 : index
    %11 = vector.load %arg3[%c3, %c0_11, %c0_12] : memref<9x64x16xf32, #tpu.memory_space<vmem>>, vector<1x64x16xf32>
    %12 = vector.shape_cast %11 : vector<1x64x16xf32> to vector<64x16xf32>
    %cst_13 = arith.constant dense<0.000000e+00> : vector<16x16xf32>
    %13 = tpu.matmul %1, %12, %cst_13 {dimension_numbers = #tpu.dot_dimension_numbers<[1], [0], [0], [1], [0, 0, 1, 1], [], []>} : vector<16x64xf32>, vector<64x16xf32>, vector<16x16xf32> -> vector<16x16xf32>
    %c4 = arith.constant 4 : index
    %c0_14 = arith.constant 0 : index
    %c0_15 = arith.constant 0 : index
    %14 = vector.load %arg3[%c4, %c0_14, %c0_15] : memref<9x64x16xf32, #tpu.memory_space<vmem>>, vector<1x64x16xf32>
    %15 = vector.shape_cast %14 : vector<1x64x16xf32> to vector<64x16xf32>
    %cst_16 = arith.constant dense<0.000000e+00> : vector<16x16xf32>
    %16 = tpu.matmul %1, %15, %cst_16 {dimension_numbers = #tpu.dot_dimension_numbers<[1], [0], [0], [1], [0, 0, 1, 1], [], []>} : vector<16x64xf32>, vector<64x16xf32>, vector<16x16xf32> -> vector<16x16xf32>
    %c5 = arith.constant 5 : index
    %c0_17 = arith.constant 0 : index
    %c0_18 = arith.constant 0 : index
    %17 = vector.load %arg3[%c5, %c0_17, %c0_18] : memref<9x64x16xf32, #tpu.memory_space<vmem>>, vector<1x64x16xf32>
    %18 = vector.shape_cast %17 : vector<1x64x16xf32> to vector<64x16xf32>
    %cst_19 = arith.constant dense<0.000000e+00> : vector<16x16xf32>
    %19 = tpu.matmul %1, %18, %cst_19 {dimension_numbers = #tpu.dot_dimension_numbers<[1], [0], [0], [1], [0, 0, 1, 1], [], []>} : vector<16x64xf32>, vector<64x16xf32>, vector<16x16xf32> -> vector<16x16xf32>
    %c6 = arith.constant 6 : index
    %c0_20 = arith.constant 0 : index
    %c0_21 = arith.constant 0 : index
    %20 = vector.load %arg3[%c6, %c0_20, %c0_21] : memref<9x64x16xf32, #tpu.memory_space<vmem>>, vector<1x64x16xf32>
    %21 = vector.shape_cast %20 : vector<1x64x16xf32> to vector<64x16xf32>
    %cst_22 = arith.constant dense<0.000000e+00> : vector<16x16xf32>
    %22 = tpu.matmul %1, %21, %cst_22 {dimension_numbers = #tpu.dot_dimension_numbers<[1], [0], [0], [1], [0, 0, 1, 1], [], []>} : vector<16x64xf32>, vector<64x16xf32>, vector<16x16xf32> -> vector<16x16xf32>
    %c7 = arith.constant 7 : index
    %c0_23 = arith.constant 0 : index
    %c0_24 = arith.constant 0 : index
    %23 = vector.load %arg3[%c7, %c0_23, %c0_24] : memref<9x64x16xf32, #tpu.memory_space<vmem>>, vector<1x64x16xf32>
    %24 = vector.shape_cast %23 : vector<1x64x16xf32> to vector<64x16xf32>
    %cst_25 = arith.constant dense<0.000000e+00> : vector<16x16xf32>
    %25 = tpu.matmul %1, %24, %cst_25 {dimension_numbers = #tpu.dot_dimension_numbers<[1], [0], [0], [1], [0, 0, 1, 1], [], []>} : vector<16x64xf32>, vector<64x16xf32>, vector<16x16xf32> -> vector<16x16xf32>
    %c8 = arith.constant 8 : index
    %c0_26 = arith.constant 0 : index
    %c0_27 = arith.constant 0 : index
    %26 = vector.load %arg3[%c8, %c0_26, %c0_27] : memref<9x64x16xf32, #tpu.memory_space<vmem>>, vector<1x64x16xf32>
    %27 = vector.shape_cast %26 : vector<1x64x16xf32> to vector<64x16xf32>
    %cst_28 = arith.constant dense<0.000000e+00> : vector<16x16xf32>
    %28 = tpu.matmul %1, %27, %cst_28 {dimension_numbers = #tpu.dot_dimension_numbers<[1], [0], [0], [1], [0, 0, 1, 1], [], []>} : vector<16x64xf32>, vector<64x16xf32>, vector<16x16xf32> -> vector<16x16xf32>
    %29 = tpu.concatenate %4, %7, %10, %13, %16, %19, %22, %25, %28 in 0 : vector<16x16xf32>, vector<16x16xf32>, vector<16x16xf32>, vector<16x16xf32>, vector<16x16xf32>, vector<16x16xf32>, vector<16x16xf32>, vector<16x16xf32>, vector<16x16xf32> -> vector<144x16xf32>
    %c0_29 = arith.constant 0 : index
    %c0_30 = arith.constant 0 : index
    %30 = vector.load %arg6[%c0_29, %c0_30] : memref<4x144xf32, #tpu.memory_space<vmem>>, vector<4x144xf32>
    %cst_31 = arith.constant dense<0.000000e+00> : vector<4x16xf32>
    %31 = tpu.matmul %30, %29, %cst_31 {dimension_numbers = #tpu.dot_dimension_numbers<[1], [0], [0], [1], [0, 0, 1, 1], [], []>} : vector<4x144xf32>, vector<144x16xf32>, vector<4x16xf32> -> vector<4x16xf32>
    %c0_32 = arith.constant 0 : index
    %c0_33 = arith.constant 0 : index
    %32 = vector.load %arg7[%c0_32, %c0_33] : memref<4x2xf32, #tpu.memory_space<vmem>>, vector<4x2xf32>
    %cst_34 = arith.constant dense<0.000000e+00> : vector<4xf32>
    %33 = vector.multi_reduction <add>, %31, %cst_34 [1] : vector<4x16xf32> to vector<4xf32>
    %34 = vector.shape_cast %33 : vector<4xf32> to vector<4x1xf32>
    %cst_35 = arith.constant 1.600000e+01 : f32
    %35 = vector.broadcast %cst_35 : f32 to vector<4x1xf32>
    %36 = arith.divf %34, %35 : vector<4x1xf32>
    %37 = vector.broadcast %36 : vector<4x1xf32> to vector<4x16xf32>
    %38 = arith.subf %31, %37 : vector<4x16xf32>
    %39 = arith.mulf %38, %38 : vector<4x16xf32>
    %cst_36 = arith.constant dense<0.000000e+00> : vector<4xf32>
    %40 = vector.multi_reduction <add>, %39, %cst_36 [1] : vector<4x16xf32> to vector<4xf32>
    %41 = vector.shape_cast %40 : vector<4xf32> to vector<4x1xf32>
    %cst_37 = arith.constant 1.600000e+01 : f32
    %42 = vector.broadcast %cst_37 : f32 to vector<4x1xf32>
    %43 = arith.divf %41, %42 : vector<4x1xf32>
    %cst_38 = arith.constant 9.99999974E-6 : f32
    %44 = vector.broadcast %cst_38 : f32 to vector<4x1xf32>
    %45 = arith.addf %43, %44 : vector<4x1xf32>
    %46 = math.rsqrt %45 : vector<4x1xf32>
    %47 = vector.broadcast %46 : vector<4x1xf32> to vector<4x16xf32>
    %48 = arith.mulf %38, %47 : vector<4x16xf32>
    %49 = vector.extract_strided_slice %32 {offsets = [0, 0], sizes = [4, 1], strides = [1, 1]} : vector<4x2xf32> to vector<4x1xf32>
    %50 = vector.broadcast %49 : vector<4x1xf32> to vector<4x16xf32>
    %51 = arith.mulf %48, %50 : vector<4x16xf32>
    %52 = vector.extract_strided_slice %32 {offsets = [0, 1], sizes = [4, 1], strides = [1, 1]} : vector<4x2xf32> to vector<4x1xf32>
    %53 = vector.broadcast %52 : vector<4x1xf32> to vector<4x16xf32>
    %54 = arith.addf %51, %53 : vector<4x16xf32>
    %cst_39 = arith.constant 0.000000e+00 : f32
    %55 = vector.broadcast %cst_39 : f32 to vector<4x16xf32>
    %56 = arith.maximumf %54, %55 : vector<4x16xf32>
    %c0_40 = arith.constant 0 : index
    %c0_41 = arith.constant 0 : index
    %c0_42 = arith.constant 0 : index
    %57 = vector.load %arg15[%c0_40, %c0_41, %c0_42] : memref<1x4x16xf32, #tpu.memory_space<vmem>>, vector<1x4x16xf32>
    %58 = vector.shape_cast %57 : vector<1x4x16xf32> to vector<4x16xf32>
    %59 = vector.shape_cast %56 : vector<4x16xf32> to vector<1x4x16xf32>
    tpu.vector_store %arg15[%c0_40, %c0_41, %c0_42], %59 {strides = array<i32>} : memref<1x4x16xf32, #tpu.memory_space<vmem>>, vector<1x4x16xf32>,
    %c0_43 = arith.constant 0 : index
    %c0_44 = arith.constant 0 : index
    %c0_45 = arith.constant 0 : index
    %60 = vector.load %arg2[%c0_43, %c0_44, %c0_45] : memref<1x4x16xf32, #tpu.memory_space<vmem>>, vector<1x4x16xf32>
    %61 = vector.shape_cast %60 : vector<1x4x16xf32> to vector<4x16xf32>
    %c0_46 = arith.constant 0 : index
    %c0_47 = arith.constant 0 : index
    %62 = vector.load %arg8[%c0_46, %c0_47] : memref<8x72xf32, #tpu.memory_space<vmem>>, vector<8x72xf32>
    %63 = tpu.concatenate %56, %61 in 0 : vector<4x16xf32>, vector<4x16xf32> -> vector<8x16xf32>
    %c0_48 = arith.constant 0 : index
    %c0_49 = arith.constant 0 : index
    %c0_50 = arith.constant 0 : index
    %64 = vector.load %arg4[%c0_48, %c0_49, %c0_50] : memref<9x16x16xf32, #tpu.memory_space<vmem>>, vector<1x16x16xf32>
    %65 = vector.shape_cast %64 : vector<1x16x16xf32> to vector<16x16xf32>
    %cst_51 = arith.constant dense<0.000000e+00> : vector<8x16xf32>
    %66 = tpu.matmul %63, %65, %cst_51 {dimension_numbers = #tpu.dot_dimension_numbers<[1], [0], [0], [1], [0, 0, 1, 1], [], []>} : vector<8x16xf32>, vector<16x16xf32>, vector<8x16xf32> -> vector<8x16xf32>
    %c1_52 = arith.constant 1 : index
    %c0_53 = arith.constant 0 : index
    %c0_54 = arith.constant 0 : index
    %67 = vector.load %arg4[%c1_52, %c0_53, %c0_54] : memref<9x16x16xf32, #tpu.memory_space<vmem>>, vector<1x16x16xf32>
    %68 = vector.shape_cast %67 : vector<1x16x16xf32> to vector<16x16xf32>
    %cst_55 = arith.constant dense<0.000000e+00> : vector<8x16xf32>
    %69 = tpu.matmul %63, %68, %cst_55 {dimension_numbers = #tpu.dot_dimension_numbers<[1], [0], [0], [1], [0, 0, 1, 1], [], []>} : vector<8x16xf32>, vector<16x16xf32>, vector<8x16xf32> -> vector<8x16xf32>
    %c2_56 = arith.constant 2 : index
    %c0_57 = arith.constant 0 : index
    %c0_58 = arith.constant 0 : index
    %70 = vector.load %arg4[%c2_56, %c0_57, %c0_58] : memref<9x16x16xf32, #tpu.memory_space<vmem>>, vector<1x16x16xf32>
    %71 = vector.shape_cast %70 : vector<1x16x16xf32> to vector<16x16xf32>
    %cst_59 = arith.constant dense<0.000000e+00> : vector<8x16xf32>
    %72 = tpu.matmul %63, %71, %cst_59 {dimension_numbers = #tpu.dot_dimension_numbers<[1], [0], [0], [1], [0, 0, 1, 1], [], []>} : vector<8x16xf32>, vector<16x16xf32>, vector<8x16xf32> -> vector<8x16xf32>
    %c3_60 = arith.constant 3 : index
    %c0_61 = arith.constant 0 : index
    %c0_62 = arith.constant 0 : index
    %73 = vector.load %arg4[%c3_60, %c0_61, %c0_62] : memref<9x16x16xf32, #tpu.memory_space<vmem>>, vector<1x16x16xf32>
    %74 = vector.shape_cast %73 : vector<1x16x16xf32> to vector<16x16xf32>
    %cst_63 = arith.constant dense<0.000000e+00> : vector<8x16xf32>
    %75 = tpu.matmul %63, %74, %cst_63 {dimension_numbers = #tpu.dot_dimension_numbers<[1], [0], [0], [1], [0, 0, 1, 1], [], []>} : vector<8x16xf32>, vector<16x16xf32>, vector<8x16xf32> -> vector<8x16xf32>
    %c4_64 = arith.constant 4 : index
    %c0_65 = arith.constant 0 : index
    %c0_66 = arith.constant 0 : index
    %76 = vector.load %arg4[%c4_64, %c0_65, %c0_66] : memref<9x16x16xf32, #tpu.memory_space<vmem>>, vector<1x16x16xf32>
    %77 = vector.shape_cast %76 : vector<1x16x16xf32> to vector<16x16xf32>
    %cst_67 = arith.constant dense<0.000000e+00> : vector<8x16xf32>
    %78 = tpu.matmul %63, %77, %cst_67 {dimension_numbers = #tpu.dot_dimension_numbers<[1], [0], [0], [1], [0, 0, 1, 1], [], []>} : vector<8x16xf32>, vector<16x16xf32>, vector<8x16xf32> -> vector<8x16xf32>
    %c5_68 = arith.constant 5 : index
    %c0_69 = arith.constant 0 : index
    %c0_70 = arith.constant 0 : index
    %79 = vector.load %arg4[%c5_68, %c0_69, %c0_70] : memref<9x16x16xf32, #tpu.memory_space<vmem>>, vector<1x16x16xf32>
    %80 = vector.shape_cast %79 : vector<1x16x16xf32> to vector<16x16xf32>
    %cst_71 = arith.constant dense<0.000000e+00> : vector<8x16xf32>
    %81 = tpu.matmul %63, %80, %cst_71 {dimension_numbers = #tpu.dot_dimension_numbers<[1], [0], [0], [1], [0, 0, 1, 1], [], []>} : vector<8x16xf32>, vector<16x16xf32>, vector<8x16xf32> -> vector<8x16xf32>
    %c6_72 = arith.constant 6 : index
    %c0_73 = arith.constant 0 : index
    %c0_74 = arith.constant 0 : index
    %82 = vector.load %arg4[%c6_72, %c0_73, %c0_74] : memref<9x16x16xf32, #tpu.memory_space<vmem>>, vector<1x16x16xf32>
    %83 = vector.shape_cast %82 : vector<1x16x16xf32> to vector<16x16xf32>
    %cst_75 = arith.constant dense<0.000000e+00> : vector<8x16xf32>
    %84 = tpu.matmul %63, %83, %cst_75 {dimension_numbers = #tpu.dot_dimension_numbers<[1], [0], [0], [1], [0, 0, 1, 1], [], []>} : vector<8x16xf32>, vector<16x16xf32>, vector<8x16xf32> -> vector<8x16xf32>
    %c7_76 = arith.constant 7 : index
    %c0_77 = arith.constant 0 : index
    %c0_78 = arith.constant 0 : index
    %85 = vector.load %arg4[%c7_76, %c0_77, %c0_78] : memref<9x16x16xf32, #tpu.memory_space<vmem>>, vector<1x16x16xf32>
    %86 = vector.shape_cast %85 : vector<1x16x16xf32> to vector<16x16xf32>
    %cst_79 = arith.constant dense<0.000000e+00> : vector<8x16xf32>
    %87 = tpu.matmul %63, %86, %cst_79 {dimension_numbers = #tpu.dot_dimension_numbers<[1], [0], [0], [1], [0, 0, 1, 1], [], []>} : vector<8x16xf32>, vector<16x16xf32>, vector<8x16xf32> -> vector<8x16xf32>
    %c8_80 = arith.constant 8 : index
    %c0_81 = arith.constant 0 : index
    %c0_82 = arith.constant 0 : index
    %88 = vector.load %arg4[%c8_80, %c0_81, %c0_82] : memref<9x16x16xf32, #tpu.memory_space<vmem>>, vector<1x16x16xf32>
    %89 = vector.shape_cast %88 : vector<1x16x16xf32> to vector<16x16xf32>
    %cst_83 = arith.constant dense<0.000000e+00> : vector<8x16xf32>
    %90 = tpu.matmul %63, %89, %cst_83 {dimension_numbers = #tpu.dot_dimension_numbers<[1], [0], [0], [1], [0, 0, 1, 1], [], []>} : vector<8x16xf32>, vector<16x16xf32>, vector<8x16xf32> -> vector<8x16xf32>
    %91 = tpu.concatenate %66, %69, %72, %75, %78, %81, %84, %87, %90 in 0 : vector<8x16xf32>, vector<8x16xf32>, vector<8x16xf32>, vector<8x16xf32>, vector<8x16xf32>, vector<8x16xf32>, vector<8x16xf32>, vector<8x16xf32>, vector<8x16xf32> -> vector<72x16xf32>
    %cst_84 = arith.constant dense<0.000000e+00> : vector<8x16xf32>
    %92 = tpu.matmul %62, %91, %cst_84 {dimension_numbers = #tpu.dot_dimension_numbers<[1], [0], [0], [1], [0, 0, 1, 1], [], []>} : vector<8x72xf32>, vector<72x16xf32>, vector<8x16xf32> -> vector<8x16xf32>
    %c0_85 = arith.constant 0 : index
    %c0_86 = arith.constant 0 : index
    %93 = vector.load %arg9[%c0_85, %c0_86] : memref<8x1xf32, #tpu.memory_space<vmem>>, vector<8x1xf32>
    %94 = vector.broadcast %93 : vector<8x1xf32> to vector<8x16xf32>
    %95 = arith.addf %92, %94 : vector<8x16xf32>
    %96 = vector.extract_strided_slice %95 {offsets = [0, 0], sizes = [4, 16], strides = [1, 1]} : vector<8x16xf32> to vector<4x16xf32>
    %97 = arith.negf %96 : vector<4x16xf32>
    %98 = math.exp %97 : vector<4x16xf32>
    %cst_87 = arith.constant 1.000000e+00 : f32
    %99 = vector.broadcast %cst_87 : f32 to vector<4x16xf32>
    %100 = arith.addf %99, %98 : vector<4x16xf32>
    %101 = arith.divf %99, %100 : vector<4x16xf32>
    %102 = vector.extract_strided_slice %95 {offsets = [4, 0], sizes = [4, 16], strides = [1, 1]} : vector<8x16xf32> to vector<4x16xf32>
    %103 = arith.negf %102 : vector<4x16xf32>
    %104 = math.exp %103 : vector<4x16xf32>
    %cst_88 = arith.constant 1.000000e+00 : f32
    %105 = vector.broadcast %cst_88 : f32 to vector<4x16xf32>
    %106 = arith.addf %105, %104 : vector<4x16xf32>
    %107 = arith.divf %105, %106 : vector<4x16xf32>
    %c0_89 = arith.constant 0 : index
    %c0_90 = arith.constant 0 : index
    %108 = vector.load %arg10[%c0_89, %c0_90] : memref<4x72xf32, #tpu.memory_space<vmem>>, vector<4x72xf32>
    %109 = arith.mulf %101, %61 : vector<4x16xf32>
    %110 = tpu.concatenate %56, %109 in 0 : vector<4x16xf32>, vector<4x16xf32> -> vector<8x16xf32>
    %c0_91 = arith.constant 0 : index
    %c0_92 = arith.constant 0 : index
    %c0_93 = arith.constant 0 : index
    %111 = vector.load %arg4[%c0_91, %c0_92, %c0_93] : memref<9x16x16xf32, #tpu.memory_space<vmem>>, vector<1x16x16xf32>
    %112 = vector.shape_cast %111 : vector<1x16x16xf32> to vector<16x16xf32>
    %cst_94 = arith.constant dense<0.000000e+00> : vector<8x16xf32>
    %113 = tpu.matmul %110, %112, %cst_94 {dimension_numbers = #tpu.dot_dimension_numbers<[1], [0], [0], [1], [0, 0, 1, 1], [], []>} : vector<8x16xf32>, vector<16x16xf32>, vector<8x16xf32> -> vector<8x16xf32>
    %c1_95 = arith.constant 1 : index
    %c0_96 = arith.constant 0 : index
    %c0_97 = arith.constant 0 : index
    %114 = vector.load %arg4[%c1_95, %c0_96, %c0_97] : memref<9x16x16xf32, #tpu.memory_space<vmem>>, vector<1x16x16xf32>
    %115 = vector.shape_cast %114 : vector<1x16x16xf32> to vector<16x16xf32>
    %cst_98 = arith.constant dense<0.000000e+00> : vector<8x16xf32>
    %116 = tpu.matmul %110, %115, %cst_98 {dimension_numbers = #tpu.dot_dimension_numbers<[1], [0], [0], [1], [0, 0, 1, 1], [], []>} : vector<8x16xf32>, vector<16x16xf32>, vector<8x16xf32> -> vector<8x16xf32>
    %c2_99 = arith.constant 2 : index
    %c0_100 = arith.constant 0 : index
    %c0_101 = arith.constant 0 : index
    %117 = vector.load %arg4[%c2_99, %c0_100, %c0_101] : memref<9x16x16xf32, #tpu.memory_space<vmem>>, vector<1x16x16xf32>
    %118 = vector.shape_cast %117 : vector<1x16x16xf32> to vector<16x16xf32>
    %cst_102 = arith.constant dense<0.000000e+00> : vector<8x16xf32>
    %119 = tpu.matmul %110, %118, %cst_102 {dimension_numbers = #tpu.dot_dimension_numbers<[1], [0], [0], [1], [0, 0, 1, 1], [], []>} : vector<8x16xf32>, vector<16x16xf32>, vector<8x16xf32> -> vector<8x16xf32>
    %c3_103 = arith.constant 3 : index
    %c0_104 = arith.constant 0 : index
    %c0_105 = arith.constant 0 : index
    %120 = vector.load %arg4[%c3_103, %c0_104, %c0_105] : memref<9x16x16xf32, #tpu.memory_space<vmem>>, vector<1x16x16xf32>
    %121 = vector.shape_cast %120 : vector<1x16x16xf32> to vector<16x16xf32>
    %cst_106 = arith.constant dense<0.000000e+00> : vector<8x16xf32>
    %122 = tpu.matmul %110, %121, %cst_106 {dimension_numbers = #tpu.dot_dimension_numbers<[1], [0], [0], [1], [0, 0, 1, 1], [], []>} : vector<8x16xf32>, vector<16x16xf32>, vector<8x16xf32> -> vector<8x16xf32>
    %c4_107 = arith.constant 4 : index
    %c0_108 = arith.constant 0 : index
    %c0_109 = arith.constant 0 : index
    %123 = vector.load %arg4[%c4_107, %c0_108, %c0_109] : memref<9x16x16xf32, #tpu.memory_space<vmem>>, vector<1x16x16xf32>
    %124 = vector.shape_cast %123 : vector<1x16x16xf32> to vector<16x16xf32>
    %cst_110 = arith.constant dense<0.000000e+00> : vector<8x16xf32>
    %125 = tpu.matmul %110, %124, %cst_110 {dimension_numbers = #tpu.dot_dimension_numbers<[1], [0], [0], [1], [0, 0, 1, 1], [], []>} : vector<8x16xf32>, vector<16x16xf32>, vector<8x16xf32> -> vector<8x16xf32>
    %c5_111 = arith.constant 5 : index
    %c0_112 = arith.constant 0 : index
    %c0_113 = arith.constant 0 : index
    %126 = vector.load %arg4[%c5_111, %c0_112, %c0_113] : memref<9x16x16xf32, #tpu.memory_space<vmem>>, vector<1x16x16xf32>
    %127 = vector.shape_cast %126 : vector<1x16x16xf32> to vector<16x16xf32>
    %cst_114 = arith.constant dense<0.000000e+00> : vector<8x16xf32>
    %128 = tpu.matmul %110, %127, %cst_114 {dimension_numbers = #tpu.dot_dimension_numbers<[1], [0], [0], [1], [0, 0, 1, 1], [], []>} : vector<8x16xf32>, vector<16x16xf32>, vector<8x16xf32> -> vector<8x16xf32>
    %c6_115 = arith.constant 6 : index
    %c0_116 = arith.constant 0 : index
    %c0_117 = arith.constant 0 : index
    %129 = vector.load %arg4[%c6_115, %c0_116, %c0_117] : memref<9x16x16xf32, #tpu.memory_space<vmem>>, vector<1x16x16xf32>
    %130 = vector.shape_cast %129 : vector<1x16x16xf32> to vector<16x16xf32>
    %cst_118 = arith.constant dense<0.000000e+00> : vector<8x16xf32>
    %131 = tpu.matmul %110, %130, %cst_118 {dimension_numbers = #tpu.dot_dimension_numbers<[1], [0], [0], [1], [0, 0, 1, 1], [], []>} : vector<8x16xf32>, vector<16x16xf32>, vector<8x16xf32> -> vector<8x16xf32>
    %c7_119 = arith.constant 7 : index
    %c0_120 = arith.constant 0 : index
    %c0_121 = arith.constant 0 : index
    %132 = vector.load %arg4[%c7_119, %c0_120, %c0_121] : memref<9x16x16xf32, #tpu.memory_space<vmem>>, vector<1x16x16xf32>
    %133 = vector.shape_cast %132 : vector<1x16x16xf32> to vector<16x16xf32>
    %cst_122 = arith.constant dense<0.000000e+00> : vector<8x16xf32>
    %134 = tpu.matmul %110, %133, %cst_122 {dimension_numbers = #tpu.dot_dimension_numbers<[1], [0], [0], [1], [0, 0, 1, 1], [], []>} : vector<8x16xf32>, vector<16x16xf32>, vector<8x16xf32> -> vector<8x16xf32>
    %c8_123 = arith.constant 8 : index
    %c0_124 = arith.constant 0 : index
    %c0_125 = arith.constant 0 : index
    %135 = vector.load %arg4[%c8_123, %c0_124, %c0_125] : memref<9x16x16xf32, #tpu.memory_space<vmem>>, vector<1x16x16xf32>
    %136 = vector.shape_cast %135 : vector<1x16x16xf32> to vector<16x16xf32>
    %cst_126 = arith.constant dense<0.000000e+00> : vector<8x16xf32>
    %137 = tpu.matmul %110, %136, %cst_126 {dimension_numbers = #tpu.dot_dimension_numbers<[1], [0], [0], [1], [0, 0, 1, 1], [], []>} : vector<8x16xf32>, vector<16x16xf32>, vector<8x16xf32> -> vector<8x16xf32>
    %138 = tpu.concatenate %113, %116, %119, %122, %125, %128, %131, %134, %137 in 0 : vector<8x16xf32>, vector<8x16xf32>, vector<8x16xf32>, vector<8x16xf32>, vector<8x16xf32>, vector<8x16xf32>, vector<8x16xf32>, vector<8x16xf32>, vector<8x16xf32> -> vector<72x16xf32>
    %cst_127 = arith.constant dense<0.000000e+00> : vector<4x16xf32>
    %139 = tpu.matmul %108, %138, %cst_127 {dimension_numbers = #tpu.dot_dimension_numbers<[1], [0], [0], [1], [0, 0, 1, 1], [], []>} : vector<4x72xf32>, vector<72x16xf32>, vector<4x16xf32> -> vector<4x16xf32>
    %c0_128 = arith.constant 0 : index
    %c0_129 = arith.constant 0 : index
    %140 = vector.load %arg11[%c0_128, %c0_129] : memref<4x1xf32, #tpu.memory_space<vmem>>, vector<4x1xf32>
    %141 = vector.broadcast %140 : vector<4x1xf32> to vector<4x16xf32>
    %142 = arith.addf %139, %141 : vector<4x16xf32>
    %cst_130 = arith.constant 1.000000e+00 : f32
    %143 = vector.broadcast %cst_130 : f32 to vector<4x16xf32>
    %144 = arith.subf %143, %107 : vector<4x16xf32>
    %145 = arith.mulf %144, %61 : vector<4x16xf32>
    %146 = math.tanh %142 : vector<4x16xf32>
    %147 = arith.mulf %107, %146 : vector<4x16xf32>
    %148 = arith.addf %145, %147 : vector<4x16xf32>
    %c0_131 = arith.constant 0 : index
    %c0_132 = arith.constant 0 : index
    %c0_133 = arith.constant 0 : index
    %149 = vector.load %arg16[%c0_131, %c0_132, %c0_133] : memref<1x4x16xf32, #tpu.memory_space<vmem>>, vector<1x4x16xf32>
    %150 = vector.shape_cast %149 : vector<1x4x16xf32> to vector<4x16xf32>
    %151 = vector.shape_cast %148 : vector<4x16xf32> to vector<1x4x16xf32>
    tpu.vector_store %arg16[%c0_131, %c0_132, %c0_133], %151 {strides = array<i32>} : memref<1x4x16xf32, #tpu.memory_space<vmem>>, vector<1x4x16xf32>,
    %c0_134 = arith.constant 0 : index
    %c0_135 = arith.constant 0 : index
    %152 = vector.load %arg12[%c0_134, %c0_135] : memref<4x36xf32, #tpu.memory_space<vmem>>, vector<4x36xf32>
    %c0_136 = arith.constant 0 : index
    %c0_137 = arith.constant 0 : index
    %c0_138 = arith.constant 0 : index
    %153 = vector.load %arg5[%c0_136, %c0_137, %c0_138] : memref<9x16x16xf32, #tpu.memory_space<vmem>>, vector<1x16x16xf32>
    %154 = vector.shape_cast %153 : vector<1x16x16xf32> to vector<16x16xf32>
    %cst_139 = arith.constant dense<0.000000e+00> : vector<4x16xf32>
    %155 = tpu.matmul %148, %154, %cst_139 {dimension_numbers = #tpu.dot_dimension_numbers<[1], [0], [0], [1], [0, 0, 1, 1], [], []>} : vector<4x16xf32>, vector<16x16xf32>, vector<4x16xf32> -> vector<4x16xf32>
    %c1_140 = arith.constant 1 : index
    %c0_141 = arith.constant 0 : index
    %c0_142 = arith.constant 0 : index
    %156 = vector.load %arg5[%c1_140, %c0_141, %c0_142] : memref<9x16x16xf32, #tpu.memory_space<vmem>>, vector<1x16x16xf32>
    %157 = vector.shape_cast %156 : vector<1x16x16xf32> to vector<16x16xf32>
    %cst_143 = arith.constant dense<0.000000e+00> : vector<4x16xf32>
    %158 = tpu.matmul %148, %157, %cst_143 {dimension_numbers = #tpu.dot_dimension_numbers<[1], [0], [0], [1], [0, 0, 1, 1], [], []>} : vector<4x16xf32>, vector<16x16xf32>, vector<4x16xf32> -> vector<4x16xf32>
    %c2_144 = arith.constant 2 : index
    %c0_145 = arith.constant 0 : index
    %c0_146 = arith.constant 0 : index
    %159 = vector.load %arg5[%c2_144, %c0_145, %c0_146] : memref<9x16x16xf32, #tpu.memory_space<vmem>>, vector<1x16x16xf32>
    %160 = vector.shape_cast %159 : vector<1x16x16xf32> to vector<16x16xf32>
    %cst_147 = arith.constant dense<0.000000e+00> : vector<4x16xf32>
    %161 = tpu.matmul %148, %160, %cst_147 {dimension_numbers = #tpu.dot_dimension_numbers<[1], [0], [0], [1], [0, 0, 1, 1], [], []>} : vector<4x16xf32>, vector<16x16xf32>, vector<4x16xf32> -> vector<4x16xf32>
    %c3_148 = arith.constant 3 : index
    %c0_149 = arith.constant 0 : index
    %c0_150 = arith.constant 0 : index
    %162 = vector.load %arg5[%c3_148, %c0_149, %c0_150] : memref<9x16x16xf32, #tpu.memory_space<vmem>>, vector<1x16x16xf32>
    %163 = vector.shape_cast %162 : vector<1x16x16xf32> to vector<16x16xf32>
    %cst_151 = arith.constant dense<0.000000e+00> : vector<4x16xf32>
    %164 = tpu.matmul %148, %163, %cst_151 {dimension_numbers = #tpu.dot_dimension_numbers<[1], [0], [0], [1], [0, 0, 1, 1], [], []>} : vector<4x16xf32>, vector<16x16xf32>, vector<4x16xf32> -> vector<4x16xf32>
    %c4_152 = arith.constant 4 : index
    %c0_153 = arith.constant 0 : index
    %c0_154 = arith.constant 0 : index
    %165 = vector.load %arg5[%c4_152, %c0_153, %c0_154] : memref<9x16x16xf32, #tpu.memory_space<vmem>>, vector<1x16x16xf32>
    %166 = vector.shape_cast %165 : vector<1x16x16xf32> to vector<16x16xf32>
    %cst_155 = arith.constant dense<0.000000e+00> : vector<4x16xf32>
    %167 = tpu.matmul %148, %166, %cst_155 {dimension_numbers = #tpu.dot_dimension_numbers<[1], [0], [0], [1], [0, 0, 1, 1], [], []>} : vector<4x16xf32>, vector<16x16xf32>, vector<4x16xf32> -> vector<4x16xf32>
    %c5_156 = arith.constant 5 : index
    %c0_157 = arith.constant 0 : index
    %c0_158 = arith.constant 0 : index
    %168 = vector.load %arg5[%c5_156, %c0_157, %c0_158] : memref<9x16x16xf32, #tpu.memory_space<vmem>>, vector<1x16x16xf32>
    %169 = vector.shape_cast %168 : vector<1x16x16xf32> to vector<16x16xf32>
    %cst_159 = arith.constant dense<0.000000e+00> : vector<4x16xf32>
    %170 = tpu.matmul %148, %169, %cst_159 {dimension_numbers = #tpu.dot_dimension_numbers<[1], [0], [0], [1], [0, 0, 1, 1], [], []>} : vector<4x16xf32>, vector<16x16xf32>, vector<4x16xf32> -> vector<4x16xf32>
    %c6_160 = arith.constant 6 : index
    %c0_161 = arith.constant 0 : index
    %c0_162 = arith.constant 0 : index
    %171 = vector.load %arg5[%c6_160, %c0_161, %c0_162] : memref<9x16x16xf32, #tpu.memory_space<vmem>>, vector<1x16x16xf32>
    %172 = vector.shape_cast %171 : vector<1x16x16xf32> to vector<16x16xf32>
    %cst_163 = arith.constant dense<0.000000e+00> : vector<4x16xf32>
    %173 = tpu.matmul %148, %172, %cst_163 {dimension_numbers = #tpu.dot_dimension_numbers<[1], [0], [0], [1], [0, 0, 1, 1], [], []>} : vector<4x16xf32>, vector<16x16xf32>, vector<4x16xf32> -> vector<4x16xf32>
    %c7_164 = arith.constant 7 : index
    %c0_165 = arith.constant 0 : index
    %c0_166 = arith.constant 0 : index
    %174 = vector.load %arg5[%c7_164, %c0_165, %c0_166] : memref<9x16x16xf32, #tpu.memory_space<vmem>>, vector<1x16x16xf32>
    %175 = vector.shape_cast %174 : vector<1x16x16xf32> to vector<16x16xf32>
    %cst_167 = arith.constant dense<0.000000e+00> : vector<4x16xf32>
    %176 = tpu.matmul %148, %175, %cst_167 {dimension_numbers = #tpu.dot_dimension_numbers<[1], [0], [0], [1], [0, 0, 1, 1], [], []>} : vector<4x16xf32>, vector<16x16xf32>, vector<4x16xf32> -> vector<4x16xf32>
    %c8_168 = arith.constant 8 : index
    %c0_169 = arith.constant 0 : index
    %c0_170 = arith.constant 0 : index
    %177 = vector.load %arg5[%c8_168, %c0_169, %c0_170] : memref<9x16x16xf32, #tpu.memory_space<vmem>>, vector<1x16x16xf32>
    %178 = vector.shape_cast %177 : vector<1x16x16xf32> to vector<16x16xf32>
    %cst_171 = arith.constant dense<0.000000e+00> : vector<4x16xf32>
    %179 = tpu.matmul %148, %178, %cst_171 {dimension_numbers = #tpu.dot_dimension_numbers<[1], [0], [0], [1], [0, 0, 1, 1], [], []>} : vector<4x16xf32>, vector<16x16xf32>, vector<4x16xf32> -> vector<4x16xf32>
    %180 = tpu.concatenate %155, %158, %161, %164, %167, %170, %173, %176, %179 in 0 : vector<4x16xf32>, vector<4x16xf32>, vector<4x16xf32>, vector<4x16xf32>, vector<4x16xf32>, vector<4x16xf32>, vector<4x16xf32>, vector<4x16xf32>, vector<4x16xf32> -> vector<36x16xf32>
    %cst_172 = arith.constant dense<0.000000e+00> : vector<4x16xf32>
    %181 = tpu.matmul %152, %180, %cst_172 {dimension_numbers = #tpu.dot_dimension_numbers<[1], [0], [0], [1], [0, 0, 1, 1], [], []>} : vector<4x36xf32>, vector<36x16xf32>, vector<4x16xf32> -> vector<4x16xf32>
    %cst_173 = arith.constant dense<0.000000e+00> : vector<4xf32>
    %182 = vector.multi_reduction <add>, %181, %cst_173 [1] : vector<4x16xf32> to vector<4xf32>
    %183 = vector.shape_cast %182 : vector<4xf32> to vector<4x1xf32>
    %cst_174 = arith.constant 1.600000e+01 : f32
    %184 = vector.broadcast %cst_174 : f32 to vector<4x1xf32>
    %185 = arith.divf %183, %184 : vector<4x1xf32>
    %186 = vector.broadcast %185 : vector<4x1xf32> to vector<4x16xf32>
    %187 = arith.subf %181, %186 : vector<4x16xf32>
    %188 = arith.mulf %187, %187 : vector<4x16xf32>
    %cst_175 = arith.constant dense<0.000000e+00> : vector<4xf32>
    %189 = vector.multi_reduction <add>, %188, %cst_175 [1] : vector<4x16xf32> to vector<4xf32>
    %190 = vector.shape_cast %189 : vector<4xf32> to vector<4x1xf32>
    %cst_176 = arith.constant 1.600000e+01 : f32
    %191 = vector.broadcast %cst_176 : f32 to vector<4x1xf32>
    %192 = arith.divf %190, %191 : vector<4x1xf32>
    %cst_177 = arith.constant 9.99999974E-6 : f32
    %193 = vector.broadcast %cst_177 : f32 to vector<4x1xf32>
    %194 = arith.addf %192, %193 : vector<4x1xf32>
    %195 = math.rsqrt %194 : vector<4x1xf32>
    %196 = vector.broadcast %195 : vector<4x1xf32> to vector<4x16xf32>
    %197 = arith.mulf %187, %196 : vector<4x16xf32>
    %c0_178 = arith.constant 0 : index
    %c0_179 = arith.constant 0 : index
    %198 = vector.load %arg13[%c0_178, %c0_179] : memref<4x2xf32, #tpu.memory_space<vmem>>, vector<4x2xf32>
    %c0_180 = arith.constant 0 : index
    %c0_181 = arith.constant 0 : index
    %199 = vector.load %arg14[%c0_180, %c0_181] : memref<4x2xf32, #tpu.memory_space<vmem>>, vector<4x2xf32>
    %200 = vector.extract_strided_slice %198 {offsets = [0, 0], sizes = [4, 1], strides = [1, 1]} : vector<4x2xf32> to vector<4x1xf32>
    %201 = vector.broadcast %200 : vector<4x1xf32> to vector<4x16xf32>
    %202 = arith.mulf %197, %201 : vector<4x16xf32>
    %203 = vector.extract_strided_slice %198 {offsets = [0, 1], sizes = [4, 1], strides = [1, 1]} : vector<4x2xf32> to vector<4x1xf32>
    %204 = vector.broadcast %203 : vector<4x1xf32> to vector<4x16xf32>
    %205 = arith.addf %202, %204 : vector<4x16xf32>
    %cst_182 = arith.constant 0.000000e+00 : f32
    %206 = vector.broadcast %cst_182 : f32 to vector<4x16xf32>
    %207 = arith.maximumf %205, %206 : vector<4x16xf32>
    %c0_183 = arith.constant 0 : index
    %c0_184 = arith.constant 0 : index
    %c0_185 = arith.constant 0 : index
    %208 = vector.load %arg17[%c0_183, %c0_184, %c0_185] : memref<1x4x16xf32, #tpu.memory_space<vmem>>, vector<1x4x16xf32>
    %209 = vector.shape_cast %208 : vector<1x4x16xf32> to vector<4x16xf32>
    %210 = vector.shape_cast %207 : vector<4x16xf32> to vector<1x4x16xf32>
    tpu.vector_store %arg17[%c0_183, %c0_184, %c0_185], %210 {strides = array<i32>} : memref<1x4x16xf32, #tpu.memory_space<vmem>>, vector<1x4x16xf32>,
    %211 = vector.extract_strided_slice %199 {offsets = [0, 0], sizes = [4, 1], strides = [1, 1]} : vector<4x2xf32> to vector<4x1xf32>
    %212 = vector.broadcast %211 : vector<4x1xf32> to vector<4x16xf32>
    %213 = arith.mulf %197, %212 : vector<4x16xf32>
    %214 = vector.extract_strided_slice %199 {offsets = [0, 1], sizes = [4, 1], strides = [1, 1]} : vector<4x2xf32> to vector<4x1xf32>
    %215 = vector.broadcast %214 : vector<4x1xf32> to vector<4x16xf32>
    %216 = arith.addf %213, %215 : vector<4x16xf32>
    %217 = math.tanh %216 : vector<4x16xf32>
    %cst_186 = arith.constant -1.000000e+01 : f32
    %cst_187 = arith.constant 2.000000e+00 : f32
    %218 = vector.broadcast %cst_186 : f32 to vector<4x16xf32>
    %219 = arith.maximumf %218, %217 : vector<4x16xf32>
    %220 = vector.broadcast %cst_187 : f32 to vector<4x16xf32>
    %221 = arith.minimumf %220, %219 : vector<4x16xf32>
    %c0_188 = arith.constant 0 : index
    %c0_189 = arith.constant 0 : index
    %c0_190 = arith.constant 0 : index
    %222 = vector.load %arg18[%c0_188, %c0_189, %c0_190] : memref<1x4x16xf32, #tpu.memory_space<vmem>>, vector<1x4x16xf32>
    %223 = vector.shape_cast %222 : vector<1x4x16xf32> to vector<4x16xf32>
    %224 = vector.shape_cast %221 : vector<4x16xf32> to vector<1x4x16xf32>
    tpu.vector_store %arg18[%c0_188, %c0_189, %c0_190], %224 {strides = array<i32>} : memref<1x4x16xf32, #tpu.memory_space<vmem>>, vector<1x4x16xf32>,
    return
  }
  func.func @transform_0(%arg0: i32) -> (i32, i32, i32) {
    %c0_i32 = arith.constant 0 : i32
    %c0_i32_0 = arith.constant 0 : i32
    %c0_i32_1 = arith.constant 0 : i32
    return %arg0, %c0_i32, %c0_i32_0 : i32, i32, i32
  }
  func.func @transform_1(%arg0: i32) -> (i32, i32, i32) {
    %c0_i32 = arith.constant 0 : i32
    %c0_i32_0 = arith.constant 0 : i32
    %c0_i32_1 = arith.constant 0 : i32
    return %arg0, %c0_i32, %c0_i32_0 : i32, i32, i32
  }
  func.func @transform_2(%arg0: i32) -> (i32, i32, i32) {
    %c0_i32 = arith.constant 0 : i32
    %c0_i32_0 = arith.constant 0 : i32
    %c0_i32_1 = arith.constant 0 : i32
    %c0_i32_2 = arith.constant 0 : i32
    return %c0_i32, %c0_i32_0, %c0_i32_1 : i32, i32, i32
  }
  func.func @transform_3(%arg0: i32) -> (i32, i32, i32) {
    %c0_i32 = arith.constant 0 : i32
    %c0_i32_0 = arith.constant 0 : i32
    %c0_i32_1 = arith.constant 0 : i32
    %c0_i32_2 = arith.constant 0 : i32
    return %c0_i32, %c0_i32_0, %c0_i32_1 : i32, i32, i32
  }
  func.func @transform_4(%arg0: i32) -> (i32, i32, i32) {
    %c0_i32 = arith.constant 0 : i32
    %c0_i32_0 = arith.constant 0 : i32
    %c0_i32_1 = arith.constant 0 : i32
    %c0_i32_2 = arith.constant 0 : i32
    return %c0_i32, %c0_i32_0, %c0_i32_1 : i32, i32, i32
  }
  func.func @transform_5(%arg0: i32) -> (i32, i32) {
    %c0_i32 = arith.constant 0 : i32
    %c0_i32_0 = arith.constant 0 : i32
    %c0_i32_1 = arith.constant 0 : i32
    return %c0_i32, %c0_i32_0 : i32, i32
  }
  func.func @transform_6(%arg0: i32) -> (i32, i32) {
    %c0_i32 = arith.constant 0 : i32
    %c0_i32_0 = arith.constant 0 : i32
    %c0_i32_1 = arith.constant 0 : i32
    return %c0_i32, %c0_i32_0 : i32, i32
  }
  func.func @transform_7(%arg0: i32) -> (i32, i32) {
    %c0_i32 = arith.constant 0 : i32
    %c0_i32_0 = arith.constant 0 : i32
    %c0_i32_1 = arith.constant 0 : i32
    return %c0_i32, %c0_i32_0 : i32, i32
  }
  func.func @transform_8(%arg0: i32) -> (i32, i32) {
    %c0_i32 = arith.constant 0 : i32
    %c0_i32_0 = arith.constant 0 : i32
    %c0_i32_1 = arith.constant 0 : i32
    return %c0_i32, %c0_i32_0 : i32, i32
  }
  func.func @transform_9(%arg0: i32) -> (i32, i32) {
    %c0_i32 = arith.constant 0 : i32
    %c0_i32_0 = arith.constant 0 : i32
    %c0_i32_1 = arith.constant 0 : i32
    return %c0_i32, %c0_i32_0 : i32, i32
  }
  func.func @transform_10(%arg0: i32) -> (i32, i32) {
    %c0_i32 = arith.constant 0 : i32
    %c0_i32_0 = arith.constant 0 : i32
    %c0_i32_1 = arith.constant 0 : i32
    return %c0_i32, %c0_i32_0 : i32, i32
  }
  func.func @transform_11(%arg0: i32) -> (i32, i32) {
    %c0_i32 = arith.constant 0 : i32
    %c0_i32_0 = arith.constant 0 : i32
    %c0_i32_1 = arith.constant 0 : i32
    return %c0_i32, %c0_i32_0 : i32, i32
  }
  func.func @transform_12(%arg0: i32) -> (i32, i32) {
    %c0_i32 = arith.constant 0 : i32
    %c0_i32_0 = arith.constant 0 : i32
    %c0_i32_1 = arith.constant 0 : i32
    return %c0_i32, %c0_i32_0 : i32, i32
  }
  func.func @transform_13(%arg0: i32) -> (i32, i32) {
    %c0_i32 = arith.constant 0 : i32
    %c0_i32_0 = arith.constant 0 : i32
    %c0_i32_1 = arith.constant 0 : i32
    return %c0_i32, %c0_i32_0 : i32, i32
  }
  func.func @transform_14(%arg0: i32) -> (i32, i32, i32) {
    %c0_i32 = arith.constant 0 : i32
    %c0_i32_0 = arith.constant 0 : i32
    %c0_i32_1 = arith.constant 0 : i32
    return %arg0, %c0_i32, %c0_i32_0 : i32, i32, i32
  }
  func.func @transform_15(%arg0: i32) -> (i32, i32, i32) {
    %c0_i32 = arith.constant 0 : i32
    %c0_i32_0 = arith.constant 0 : i32
    %c0_i32_1 = arith.constant 0 : i32
    return %arg0, %c0_i32, %c0_i32_0 : i32, i32, i32
  }
  func.func @transform_16(%arg0: i32) -> (i32, i32, i32) {
    %c0_i32 = arith.constant 0 : i32
    %c0_i32_0 = arith.constant 0 : i32
    %c0_i32_1 = arith.constant 0 : i32
    return %arg0, %c0_i32, %c0_i32_0 : i32, i32, i32
  }
  func.func @transform_17(%arg0: i32) -> (i32, i32, i32) {
    %c0_i32 = arith.constant 0 : i32
    %c0_i32_0 = arith.constant 0 : i32
    %c0_i32_1 = arith.constant 0 : i32
    return %arg0, %c0_i32, %c0_i32_0 : i32, i32, i32
  }
}

</mosaic_0001>

<bundles_post_ra>
// kernel: gaussian_policy_forward.3
= control target key start
LH: loop header
LB: loop body
LE: loop exit
PB: predicated region body
PF: predicated region fallthrough
CT: control target
= control target key end

     0   :  { %s828_s12 = smov 0   ;;  %s914_s0 = inlined_call_operand.vmem [shape: bf16[2,384,256], index: 0, kind: input, shape index: {}]   ;;  %s915_s1 = inlined_call_operand.vmem [shape: bf16[8,384], index: 1, kind: input, shape index: {}]   ;;  %s916_s2 = inlined_call_operand.vmem [shape: f32[8,2], index: 2, kind: input, shape index: {}]   ;;  %s917_s3 = inlined_call_operand.vmem [shape: f32[2,8,256], index: 3, kind: output, shape index: {}]  }
   0x1 LB: > { %s645_s13 = sadd.s32 4294967295, %s804_s12   ;;  %p649_p0 = scmp.ge.s32.totalorder %s804_s12, 1  ;;  %s804_s12 = sphi %s828_s12, %s13_s12  }
   0x2   : > { %p137_p1 = scmp.lt.s32.totalorder %s804_s12, 3 }
   0x4   : > { %p138_p2 = pnand %p649_p0, %p137_p1 }
   0x5   : > { %p161_p3 = scmp.lt.s32.totalorder (!%p138_p2), %s645_s13, 1 }
   0x6   : > { %141 = sbr.rel (%p138_p2) target bundleno = 590 (0x24e), region = 32 }
   0xb   : > { %v806_v0 = vmov 0   ;;  %v839_v1 = vld [vmem:[%s915_s1] sm:$0xff]  ;;  %s919_s13 = smov (!%p161_p3, %s645_s13), 1  ;;  %v790_v42 = vld [vmem:[%s915_s1 + $0x8] ss:$0 sps:$4 sm:$0xff]  }
   0xc   : > { %546 = vmatprep.mubr.bf16.mxu1 %v806_v0  ;;  %718 = vset.pattern.permute.xlu1 %v806_v0  ;;  %v654_v2 = vcombine.high %v839_v1, %v839_v1  ;;  %s707_s16 = smul.u32 384, %s919_s13  ;;  %v653_v52 = vcombine.low %v839_v1, %v839_v1  ;;  %v555_v0 = vld [vmem:[%s916_s2] sm:$0xff]  ;;  %v807_v1 = vmov 1   ;;  %s706_s24 = sshll.u32 %s919_s13, 4 }
   0xd   : > { %575 = vperm.xlu1 %718, %v555_v0   ;;  %720 = vset.pattern.permute.xlu0 %v807_v1  ;;  %s170_s27 = scalar_lea.vmem %s917_s3, %s706_s24 }
   0xe   : > { %505 = vmatprep.mubr.bf16.mxu0 %v654_v2  ;;  %s849_s19 = scalar_lea.vmem %s914_s0, %s707_s16 }
   0xf   : > { %v721_v3 = vld [vmem:[%s849_s19 + $0x74] ss:$8 sps:$4 sm:$0xff]   ;;  %v723_v4 = vld [vmem:[%s849_s19 + $0x70] ss:$8 sps:$4 sm:$0xff]   ;;  %v724_v5 = vld [vmem:[%s849_s19 + $0x64] ss:$8 sps:$4 sm:$0xff]  }
  0x10   : > { %473 = vmatprep.subr.bf16.mxu0 %v721_v3  ;;  %v726_v6 = vld [vmem:[%s849_s19 + $0x60] ss:$8 sps:$4 sm:$0xff]   ;;  %v727_v7 = vld [vmem:[%s849_s19 + $0x54] ss:$8 sps:$4 sm:$0xff]   ;;  %v729_v8 = vld [vmem:[%s849_s19 + $0x50] ss:$8 sps:$4 sm:$0xff]  }
  0x11   : > { %474 = vmatpush1.bf16.msra.mxu0 %v723_v4  ;;  %v730_v9 = vld [vmem:[%s849_s19 + $0x44] ss:$8 sps:$4 sm:$0xff]   ;;  %v742_v10 = vld [vmem:[%s849_s19 + $0x174] ss:$8 sps:$4 sm:$0xff]   ;;  %v744_v11 = vld [vmem:[%s849_s19 + $0x170] ss:$8 sps:$4 sm:$0xff]   ;;  %719 = vset.pattern.permute.xlu1 %v807_v1 }
  0x12   : > { %475 = vmatprep.subr.bf16.mxu0 %v724_v5  ;;  %v732_v12 = vld [vmem:[%s849_s19 + $0x40] ss:$8 sps:$4 sm:$0xff]   ;;  %v733_v13 = vld [vmem:[%s849_s19 + $0x34] ss:$8 sps:$4 sm:$0xff]   ;;  %514 = vmatprep.subr.bf16.mxu1 %v742_v10  ;;  %v748_v14 = vld [vmem:[%s849_s19 + $0x164] ss:$8 sps:$4 sm:$0xff]  }
  0x13   : > { %515 = vmatpush1.bf16.msra.mxu1 %v744_v11  ;;  %v750_v15 = vld [vmem:[%s849_s19 + $0x160] ss:$8 sps:$4 sm:$0xff]   ;;  %v735_v16 = vld [vmem:[%s849_s19 + $0x30] ss:$8 sps:$4 sm:$0xff]   ;;  %v754_v17 = vld [vmem:[%s849_s19 + $0x154] ss:$8 sps:$4 sm:$0xff]   ;;  %581 = vperm.xlu1 %719, %v555_v0  }
  0x14   : > { %516 = vmatprep.subr.bf16.mxu1 %v748_v14  ;;  %v736_v18 = vld [vmem:[%s849_s19 + $0x24] ss:$8 sps:$4 sm:$0xff]   ;;  %v756_v19 = vld [vmem:[%s849_s19 + $0x150] ss:$8 sps:$4 sm:$0xff]   ;;  %v738_v21 = vld [vmem:[%s849_s19 + $0x20] ss:$8 sps:$4 sm:$0xff]  }
  0x15   : > { %476 = vmatpush1.bf16.msra.mxu0 %v726_v6  ;;  %v760_v20 = vld [vmem:[%s849_s19 + $0x144] ss:$8 sps:$4 sm:$0xff]   ;;  %v739_v22 = vld [vmem:[%s849_s19 + $0x14] ss:$8 sps:$4 sm:$0xff]   ;;  %v762_v23 = vld [vmem:[%s849_s19 + $0x140] ss:$8 sps:$4 sm:$0xff]  }
  0x16   : > { %477 = vmatprep.subr.bf16.mxu0 %v727_v7  ;;  %v766_v24 = vld [vmem:[%s849_s19 + $0x134] ss:$8 sps:$4 sm:$0xff]   ;;  %v741_v25 = vld [vmem:[%s849_s19 + $0x10] ss:$8 sps:$4 sm:$0xff]   ;;  %v745_v26 = vld [vmem:[%s849_s19 + $0x4] ss:$8 sps:$4 sm:$0xff]  }
  0x17   : > { %517 = vmatpush1.bf16.msra.mxu1 %v750_v15  ;;  %v768_v27 = vld [vmem:[%s849_s19 + $0x130] ss:$8 sps:$4 sm:$0xff]   ;;  %v772_v28 = vld [vmem:[%s849_s19 + $0x124] ss:$8 sps:$4 sm:$0xff]   ;;  %v747_v29 = vld [vmem:[%s849_s19] ss:$8 sps:$4 sm:$0xff]  }
  0x18   : > { %518 = vmatprep.subr.bf16.mxu1 %v754_v17  ;;  %v751_v30 = vld [vmem:[%s849_s19 + $0xf4] ss:$8 sps:$4 sm:$0xff]   ;;  %v774_v31 = vld [vmem:[%s849_s19 + $0x120] ss:$8 sps:$4 sm:$0xff]   ;;  %v753_v33 = vld [vmem:[%s849_s19 + $0xf0] ss:$8 sps:$4 sm:$0xff]  }
  0x19   : > { %478 = vmatpush1.bf16.msra.mxu0 %v729_v8  ;;  %v778_v32 = vld [vmem:[%s849_s19 + $0x114] ss:$8 sps:$4 sm:$0xff]   ;;  %v757_v34 = vld [vmem:[%s849_s19 + $0xe4] ss:$8 sps:$4 sm:$0xff]   ;;  %v780_v35 = vld [vmem:[%s849_s19 + $0x110] ss:$8 sps:$4 sm:$0xff]  }
  0x1a   : > { %479 = vmatprep.subr.bf16.mxu0 %v730_v9  ;;  %v784_v36 = vld [vmem:[%s849_s19 + $0x104] ss:$8 sps:$4 sm:$0xff]   ;;  %v759_v37 = vld [vmem:[%s849_s19 + $0xe0] ss:$8 sps:$4 sm:$0xff]   ;;  %v763_v38 = vld [vmem:[%s849_s19 + $0xd4] ss:$8 sps:$4 sm:$0xff]  }
  0x1b   : > { %519 = vmatpush1.bf16.msra.mxu1 %v756_v19  ;;  %v786_v39 = vld [vmem:[%s849_s19 + $0x100] ss:$8 sps:$4 sm:$0xff]   ;;  %v765_v40 = vld [vmem:[%s849_s19 + $0xd0] ss:$8 sps:$4 sm:$0xff]   ;;  %v769_v41 = vld [vmem:[%s849_s19 + $0xc4] ss:$8 sps:$4 sm:$0xff]  }
  0x1c   : > { %520 = vmatprep.subr.bf16.mxu1 %v760_v20  ;;  %v771_v43 = vld [vmem:[%s849_s19 + $0xc0] ss:$8 sps:$4 sm:$0xff]   ;;  %v775_v44 = vld [vmem:[%s849_s19 + $0xb4] ss:$8 sps:$4 sm:$0xff]   ;;  %v777_v45 = vld [vmem:[%s849_s19 + $0xb0] ss:$8 sps:$4 sm:$0xff]  }
  0x1d   : > { %480 = vmatpush1.bf16.msra.mxu0 %v732_v12  ;;  %v781_v46 = vld [vmem:[%s849_s19 + $0xa4] ss:$8 sps:$4 sm:$0xff]   ;;  %v783_v47 = vld [vmem:[%s849_s19 + $0xa0] ss:$8 sps:$4 sm:$0xff]   ;;  %v787_v48 = vld [vmem:[%s849_s19 + $0x94] ss:$8 sps:$4 sm:$0xff]  }
  0x1e   : > { %481 = vmatprep.subr.bf16.mxu0 %v733_v13  ;;  %v789_v49 = vld [vmem:[%s849_s19 + $0x90] ss:$8 sps:$4 sm:$0xff]   ;;  %v791_v50 = vld [vmem:[%s849_s19 + $0x84] ss:$8 sps:$4 sm:$0xff]   ;;  %v793_v51 = vld [vmem:[%s849_s19 + $0x80] ss:$8 sps:$4 sm:$0xff]  }
  0x1f   : > { %521 = vmatpush1.bf16.msra.mxu1 %v762_v23 }
  0x20   : > { %522 = vmatprep.subr.bf16.mxu1 %v766_v24 }
  0x21   : > { %482 = vmatpush1.bf16.msra.mxu0 %v735_v16 }
  0x22   : > { %483 = vmatprep.subr.bf16.mxu0 %v736_v18 }
  0x23   : > { %523 = vmatpush1.bf16.msra.mxu1 %v768_v27 }
  0x24   : > { %524 = vmatprep.subr.bf16.mxu1 %v772_v28 }
  0x25   : > { %484 = vmatpush1.bf16.msra.mxu0 %v738_v21 }
  0x26   : > { %485 = vmatprep.subr.bf16.mxu0 %v739_v22 }
  0x27   : > { %525 = vmatpush1.bf16.msra.mxu1 %v774_v31 }
  0x28   : > { %526 = vmatprep.subr.bf16.mxu1 %v778_v32 }
  0x29   : > { %486 = vmatpush1.bf16.msra.mxu0 %v741_v25 }
  0x2a   : > { %487 = vmatprep.subr.bf16.mxu0 %v745_v26 }
  0x2b   : > { %527 = vmatpush1.bf16.msra.mxu1 %v780_v35 }
  0x2c   : > { %528 = vmatprep.subr.bf16.mxu1 %v784_v36 }
  0x2d   : > { %488 = vmatpush1.bf16.msra.mxu0 %v747_v29 }
  0x2e   : > { %489 = vmatprep.subr.bf16.mxu0 %v751_v30 }
  0x2f   : > { %529 = vmatpush1.bf16.msra.mxu1 %v786_v39 }
  0x31   : > { %490 = vmatpush2.bf16.msra.mxu0 %v753_v33 }
  0x32   : > { %491 = vmatprep.subr.bf16.mxu0 %v757_v34  ;;  %547 = vmatmul.mubr.bf16.vlgmr.msra.gmra.mxu1 %v790_v42 }
  0x35   : > { %492 = vmatpush2.bf16.msra.mxu0 %v759_v37 }
  0x36   : > { %493 = vmatprep.subr.bf16.mxu0 %v763_v38 }
  0x39   : > { %494 = vmatpush2.bf16.msra.mxu0 %v765_v40 }
  0x3a   : > { %495 = vmatprep.subr.bf16.mxu0 %v769_v41 }
  0x3d   : > { %496 = vmatpush2.bf16.msra.mxu0 %v771_v43 }
  0x3e   : > { %497 = vmatprep.subr.bf16.mxu0 %v775_v44 }
  0x41   : > { %498 = vmatpush2.bf16.msra.mxu0 %v777_v45 }
  0x42   : > { %499 = vmatprep.subr.bf16.mxu0 %v781_v46 }
  0x45   : > { %500 = vmatpush2.bf16.msra.mxu0 %v783_v47 }
  0x46   : > { %501 = vmatprep.subr.bf16.mxu0 %v787_v48 }
  0x49   : > { %502 = vmatpush2.bf16.msra.mxu0 %v789_v49 }
  0x4a   : > { %503 = vmatprep.subr.bf16.mxu0 %v791_v50 }
  0x4d   : > { %504 = vmatpush2.bf16.msra.mxu0 %v793_v51 }
  0x50   : > { %506 = vmatmul.mubr.bf16.vlgmr.msra.gmra.mxu0 %v653_v52 }
  0x88   : > { %v576_v12 = vpop.permute.xlu1 %575 }
  0x8e   : > { %v582_v16 = vpop.permute.xlu1 %581 }
  0xf2   : > { %v548_v53 = vpop.f32.mrf.mxu1 }
  0xf4   : > { %v550_v54 = vpop.f32.mrf.mxu1 }
  0xf6   : > { %v552_v55 = vpop.f32.mrf.mxu1 }
  0xf8   : > { %v553_v56 = vpop.f32.mrf.mxu1 }
 0x110   : > { %v507_v57 = vpop.f32.mrf.mxu0 }
 0x111   : > { %v549_v59 = vadd.f32 %v548_v53, %v507_v57 }
 0x112   : > { %v509_v58 = vpop.f32.mrf.mxu0 }
 0x113   : > { %v551_v60 = vadd.f32 %v550_v54, %v509_v58 }
 0x114   : > { %v511_v61 = vpop.f32.mrf.mxu0 }
 0x115   : > { %v556_v62 = vadd.f32 %v551_v60, %v549_v59 }
 0x116   : > { %v512_v63 = vpop.f32.mrf.mxu0 }
 0x117   : > { %557 = vadd.xlane.f32.xlu0 %v556_v62 }
 0x1a0   : > { %v558_v2 = vpop.xlane.xlu0 %557 }
 0x1a1   : > { %v560_v3 = vmul.f32 0.00390625, %v558_v2 }
 0x1a3   : > { %v561_v4 = vsub.f32 %v549_v59, %v560_v3  ;;  %v562_v5 = vsub.f32 %v551_v60, %v560_v3 }
 0x1a5   : > { %v563_v6 = vmul.f32 %v561_v4, %v561_v4  ;;  %v564_v7 = vmul.f32 %v562_v5, %v562_v5 }
 0x1a7   : > { %v565_v8 = vadd.f32 %v564_v7, %v563_v6 }
 0x1a9   : > { %566 = vadd.xlane.f32.xlu0 %v565_v8 }
 0x232   : > { %v567_v9 = vpop.xlane.xlu0 %566 }
 0x233   : > { %v568_v10 = vmul.f32 0.00390625, %v567_v9 }
 0x235   : > { %v569_v11 = vadd.f32 1e-05, %v568_v10 }
 0x237   : > { %796 = vrsqrt.f32 %v569_v11 }
 0x244   : > { %v797_v13 = vpop.eup %796 }
 0x245   : > { %v571_v14 = vmul.f32 %v797_v13, %v561_v4  ;;  %v572_v15 = vmul.f32 %v797_v13, %v562_v5 }
 0x247   : > { %v578_v17 = vmul.f32 %v576_v12, %v571_v14  ;;  %v579_v18 = vmul.f32 %v576_v12, %v572_v15 }
 0x249   : > { %v584_v19 = vadd.f32 %v582_v16, %v578_v17  ;;  %v585_v20 = vadd.f32 %v582_v16, %v579_v18 }
 0x24b   : > { %v586_v21 = vmax.f32 %v584_v19, 0.0  ;;  %v587_v22 = vmax.f32 %v585_v20, 0.0 }
 0x24d   : > { %588 = vst [vmem:[%s170_s27] sm:$0xff] %v586_v21  ;;  %589 = vst [vmem:[%s170_s27 + $0x8] sm:$0xff] %v587_v22 }
 0x24e PF: > { %s13_s12 = sadd.s32 1, %s804_s12  }
 0x24f   : > { %p10_p4 = scmp.ge.s32.totalorder %s13_s12, 4  }
 0x251   :  { %12 = sbr.rel (!%p10_p4) target bundleno = 1 (0x1), region = 62 }

// kernel: gaussian_policy_forward.4
= control target key start
LH: loop header
LB: loop body
LE: loop exit
PB: predicated region body
PF: predicated region fallthrough
CT: control target
= control target key end

     0   :  { %s508_s12 = smov 0   ;;  %s544_s0 = inlined_call_operand.vmem [shape: bf16[2,128,64], index: 0, kind: input, shape index: {}]   ;;  %s545_s1 = inlined_call_operand.vmem [shape: bf16[16,128], index: 1, kind: input, shape index: {}]   ;;  %s546_s2 = inlined_call_operand.vmem [shape: f32[16,2], index: 2, kind: input, shape index: {}]   ;;  %s547_s3 = inlined_call_operand.vmem [shape: f32[2,16,64], index: 3, kind: output, shape index: {}]  }
   0x1 LB: > { %s396_s13 = sadd.s32 4294967295, %s482_s12   ;;  %p400_p0 = scmp.ge.s32.totalorder %s482_s12, 1  ;;  %s482_s12 = sphi %s508_s12, %s13_s12  }
   0x2   : > { %p137_p1 = scmp.lt.s32.totalorder %s482_s12, 3 }
   0x4   : > { %p138_p2 = pnand %p400_p0, %p137_p1 }
   0x5   : > { %p161_p3 = scmp.lt.s32.totalorder (!%p138_p2), %s396_s13, 1 }
   0x6   : > { %141 = sbr.rel (%p138_p2) target bundleno = 554 (0x22a), region = 32 }
   0xb   : > { %v484_v0 = vmov 0.0   ;;  %vm485_vm0 = vmmov 0   ;;  %s549_s13 = smov (!%p161_p3, %s396_s13), 1  ;;  %v471_v9 = vld [vmem:[%s545_s1] sm:$0xff]   ;;  %v286_v10 = vld [vmem:[%s546_s2 + $0x8] sm:$0xff]  ;;  %v486_v11 = vmov 0  }
   0xc   : > { %427 = vmatprep.subr.bf16.mxu0 %v484_v0  ;;  %443 = vmatprep.mubr.msk.bf16.mxu0 %vm485_vm0, %v484_v0  ;;  %s416_s14 = sshll.u32 %s549_s13, 6  ;;  %v285_v12 = vld [vmem:[%s546_s2] sm:$0xff]  ;;  %v487_v13 = vmov 1   ;;  %vm287_vm1 = vcmask 523264   ;;  %s417_s24 = sshll.u32 %s549_s13, 4 }
   0xd   : > { %s165_s17 = scalar_lea.vmem %s544_s0, %s416_s14  ;;  %460 = vset.pattern.permute.xlu1 %v486_v11  ;;  %459 = vset.pattern.permute.xlu0 %v486_v11  ;;  %s170_s27 = scalar_lea.vmem %s547_s3, %s417_s24 }
   0xe   : > { %v463_v1 = vld [vmem:[%s165_s17 + $0x38] sm:$0xff]   ;;  %v464_v2 = vld [vmem:[%s165_s17 + $0x30] sm:$0xff]   ;;  %v465_v3 = vld [vmem:[%s165_s17 + $0x28] sm:$0xff]   ;;  %322 = vperm.xlu1 %460, %v286_v10  }
   0xf   : > { %428 = vmatpush3.bf16.msra.mxu0 %v463_v1  ;;  %v466_v4 = vld [vmem:[%s165_s17 + $0x20] sm:$0xff]   ;;  %v467_v5 = vld [vmem:[%s165_s17 + $0x18] sm:$0xff]   ;;  %v468_v6 = vld [vmem:[%s165_s17 + $0x10] sm:$0xff]  }
  0x10   : > { %429 = vmatprep.subr.bf16.mxu0 %v484_v0  ;;  %v469_v7 = vld [vmem:[%s165_s17 + $0x8] sm:$0xff]   ;;  %v470_v8 = vld [vmem:[%s165_s17] sm:$0xff]  }
  0x12   : > { %461 = vset.pattern.permute.xlu1 %v487_v13 }
  0x13   : > { %430 = vmatpush3.bf16.msra.mxu0 %v464_v2  ;;  %328 = vperm.xlu1 %461, %v285_v12  }
  0x14   : > { %431 = vmatprep.subr.bf16.mxu0 %v484_v0 }
  0x17   : > { %432 = vmatpush3.bf16.msra.mxu0 %v465_v3 }
  0x18   : > { %433 = vmatprep.subr.bf16.mxu0 %v484_v0 }
  0x1b   : > { %434 = vmatpush3.bf16.msra.mxu0 %v466_v4 }
  0x1c   : > { %435 = vmatprep.subr.bf16.mxu0 %v484_v0 }
  0x1f   : > { %436 = vmatpush3.bf16.msra.mxu0 %v467_v5 }
  0x20   : > { %437 = vmatprep.subr.bf16.mxu0 %v484_v0 }
  0x23   : > { %438 = vmatpush3.bf16.msra.mxu0 %v468_v6 }
  0x24   : > { %439 = vmatprep.subr.bf16.mxu0 %v484_v0 }
  0x27   : > { %440 = vmatpush3.bf16.msra.mxu0 %v469_v7 }
  0x28   : > { %441 = vmatprep.subr.bf16.mxu0 %v484_v0 }
  0x2b   : > { %442 = vmatpush3.bf16.msra.mxu0 %v470_v8 }
  0x2e   : > { %444 = vmatmul.mubr.bf16.vlgmr.msra.gmra.mxu0 %v471_v9 }
  0x89   : > { %v323_v30 = vpop.permute.xlu1 %322 }
  0x8e   : > { %v329_v31 = vpop.permute.xlu1 %328 }
  0xee   : > { %v278_v14 = vpop.f32.mrf.mxu0 }
  0xef   : > { %v288_v15 = vsel %vm287_vm1, %v278_v14, 0.0 }
  0xf0   : > { %289 = vadd.xlane.f32.xlu0 %v288_v15  ;;  %v445_v16 = vpop.f32.mrf.mxu0 }
  0xf2   : > { %v281_v17 = vpop.f32.mrf.mxu0 }
  0xf3   : > { %v291_v18 = vsel %vm287_vm1, %v281_v17, 0.0 }
  0xf4   : > { %292 = vadd.xlane.f32.xlu0 %v291_v18  ;;  %v446_v19 = vpop.f32.mrf.mxu0 }
 0x10a   : > { %317 = vperm.xlu0 %459, %v285_v12  }
 0x10e   : > { %462 = vset.pattern.permute.xlu0 %v487_v13 }
 0x179   : > { %v290_v20 = vpop.xlane.xlu0 %289 }
 0x17a   : > { %v295_v21 = vmul.f32 0.015625, %v290_v20 }
 0x17c   : > { %v297_v22 = vsub.f32 %v278_v14, %v295_v21 }
 0x17d   : > { %v293_v23 = vpop.xlane.xlu0 %292 }
 0x17e   : > { %v296_v24 = vmul.f32 0.015625, %v293_v23  ;;  %v299_v25 = vmul.f32 %v297_v22, %v297_v22 }
 0x180   : > { %v298_v26 = vsub.f32 %v281_v17, %v296_v24  ;;  %v301_v27 = vsel %vm287_vm1, %v299_v25, 0.0 }
 0x181   : > { %302 = vadd.xlane.f32.xlu1 %v301_v27 }
 0x182   : > { %v300_v28 = vmul.f32 %v298_v26, %v298_v26 }
 0x184   : > { %v304_v29 = vsel %vm287_vm1, %v300_v28, 0.0 }
 0x185   : > { %305 = vadd.xlane.f32.xlu1 %v304_v29  ;;  %v318_v39 = vpop.permute.xlu0 %317 }
 0x196   : > { %332 = vperm.xlu1 %461, %v286_v10  }
 0x20a   : > { %v303_v32 = vpop.xlane.xlu1 %302 }
 0x20b   : > { %v307_v33 = vmul.f32 0.015625, %v303_v32 }
 0x20d   : > { %v309_v34 = vadd.f32 1e-05, %v307_v33 }
 0x20e   : > { %v306_v35 = vpop.xlane.xlu1 %305 }
 0x20f   : > { %472 = vrsqrt.f32 %v309_v34  ;;  %v308_v36 = vmul.f32 0.015625, %v306_v35 }
 0x211   : > { %v310_v37 = vadd.f32 1e-05, %v308_v36 }
 0x212   : > { %v333_v47 = vpop.permute.xlu1 %332 }
 0x213   : > { %474 = vrsqrt.f32 %v310_v37 }
 0x21c   : > { %v473_v38 = vpop.eup %472 }
 0x21d   : > { %v313_v40 = vmul.f32 %v473_v38, %v297_v22 }
 0x21f   : > { %v325_v41 = vmul.f32 %v318_v39, %v313_v40 }
 0x220   : > { %v475_v42 = vpop.eup %474 }
 0x221   : > { %v314_v43 = vmul.f32 %v475_v42, %v298_v26  ;;  %v335_v44 = vadd.f32 %v329_v31, %v325_v41 }
 0x223   : > { %v326_v45 = vmul.f32 %v323_v30, %v314_v43  ;;  %v337_v46 = vmax.f32 %v335_v44, 0.0 }
 0x225   : > { %v336_v48 = vadd.f32 %v333_v47, %v326_v45  ;;  %339 = vst.msk [vmem:[%s170_s27] sm:$0xff] %vm287_vm1, %v337_v46 }
 0x227   : > { %v338_v49 = vmax.f32 %v336_v48, 0.0 }
 0x229   : > { %340 = vst.msk [vmem:[%s170_s27 + $0x8] sm:$0xff] %vm287_vm1, %v338_v49 }
 0x22a PF: > { %s13_s12 = sadd.s32 1, %s482_s12  }
 0x22b   : > { %p10_p4 = scmp.ge.s32.totalorder %s13_s12, 4  }
 0x22d   :  { %12 = sbr.rel (!%p10_p4) target bundleno = 1 (0x1), region = 62 }

// kernel: gaussian_policy_forward.5
= control target key start
LH: loop header
LB: loop body
LE: loop exit
PB: predicated region body
PF: predicated region fallthrough
CT: control target
= control target key end

     0   :  { %s4806_s24 = smov 0   ;;  %s5525_s0 = inlined_call_operand.vmem [shape: f32[2,16,64], index: 0, kind: input, shape index: {}]   ;;  %s5526_s1 = inlined_call_operand.vmem [shape: f32[2,4,16], index: 1, kind: input, shape index: {}]   ;;  %s5527_s2 = inlined_call_operand.vmem [shape: f32[9,64,16], index: 2, kind: input, shape index: {}]   ;;  %s5528_s3 = inlined_call_operand.vmem [shape: f32[9,16,16], index: 3, kind: input, shape index: {}]   ;;  %s5529_s4 = inlined_call_operand.vmem [shape: f32[9,16,16], index: 4, kind: input, shape index: {}]   ;;  %s5530_s5 = inlined_call_operand.vmem [shape: f32[4,144], index: 5, kind: input, shape index: {}]   ;;  %s5531_s6 = inlined_call_operand.vmem [shape: f32[4,2], index: 6, kind: input, shape index: {}]   ;;  %s5532_s7 = inlined_call_operand.vmem [shape: f32[8,72], index: 7, kind: input, shape index: {}]   ;;  %s5533_s8 = inlined_call_operand.vmem [shape: f32[8,1], index: 8, kind: input, shape index: {}]   ;;  %s5534_s9 = inlined_call_operand.vmem [shape: f32[4,72], index: 9, kind: input, shape index: {}]   ;;  %s5535_s10 = inlined_call_operand.vmem [shape: f32[4,1], index: 10, kind: input, shape index: {}]   ;;  %s5536_s11 = inlined_call_operand.vmem [shape: f32[4,36], index: 11, kind: input, shape index: {}]   ;;  %s5537_s12 = inlined_call_operand.vmem [shape: f32[4,2], index: 12, kind: input, shape index: {}]   ;;  %s5538_s13 = inlined_call_operand.vmem [shape: f32[4,2], index: 13, kind: input, shape index: {}]   ;;  %s5539_s14 = inlined_call_operand.vmem [shape: f32[2,4,16], index: 14, kind: output, shape index: {0}]   ;;  %s5540_s15 = inlined_call_operand.vmem [shape: f32[2,4,16], index: 15, kind: output, shape index: {1}]   ;;  %s5541_s16 = inlined_call_operand.vmem [shape: f32[2,4,16], index: 16, kind: output, shape index: {2}]   ;;  %s5542_s17 = inlined_call_operand.vmem [shape: f32[2,4,16], index: 17, kind: output, shape index: {3}]  }
   0x1   :  { %5543 = sst [smem:[#allocation2_spill]] %s5525_s0 }
   0x2   :  { %5544 = sst [smem:[#allocation3_spill]] %s5526_s1 }
   0x3 LB: > { %s3899_s25 = sadd.s32 4294967295, %s4710_s24   ;;  %p3903_p0 = scmp.ge.s32.totalorder %s4710_s24, 1  ;;  %s4710_s24 = sphi %s4806_s24, %s28_s24  }
   0x4   : > { %p503_p1 = scmp.lt.s32.totalorder %s4710_s24, 3 }
   0x6   : > { %p504_p2 = pnand %p3903_p0, %p503_p1 }
   0x7   : > { %p570_p3 = scmp.lt.s32.totalorder (!%p504_p2), %s3899_s25, 1  ;;  %s5545_s27 = sld [smem:[#allocation2_spill]] (!%p504_p2) }
   0x8   : > { %507 = sbr.rel (%p504_p2) target bundleno = 2482 (0x9b2), region = 76  ;;  %s5546_s20 = sld [smem:[#allocation3_spill]] (!%p504_p2) }
   0xd   : > { %v3920_v0 = vld [vmem:[%s5527_s2 + $0x78] sm:$0xff]  ;;  %v3919_v2 = vld [vmem:[%s5527_s2 + $0x70] sm:$0xff]  ;;  %v3918_v4 = vld [vmem:[%s5527_s2 + $0x68] sm:$0xff]  ;;  %s5548_s25 = smov (!%p570_p3, %s3899_s25), 1  ;;  %vm605_vm0 = vcmask 523264   ;;  %vm1362_vm1 = vcmask 130048  }
   0xe   : > { %v604_v1 = vld [vmem:[%s5527_s2 + $0x38] sm:$0xff]  ;;  %4277 = vmatprep.subr.mxu1 %v3920_v0  ;;  %v603_v3 = vld [vmem:[%s5527_s2 + $0x30] sm:$0xff]  ;;  %v602_v5 = vld [vmem:[%s5527_s2 + $0x28] sm:$0xff]  ;;  %s4060_s19 = sshll.u32 %s5548_s25, 4  ;;  %vm1436_vm2 = vcmask 125952   ;;  %vm4715_vm3 = vmmov 0  }
   0xf   : > { %4258 = vmatprep.subr.mxu0 %v604_v1  ;;  %4278 = vmatpush3.msra.mxu1 %v3920_v0  ;;  %v3917_v6 = vld [vmem:[%s5527_s2 + $0x60] sm:$0xff]  ;;  %v3916_v8 = vld [vmem:[%s5527_s2 + $0x58] sm:$0xff]  ;;  %v3915_v10 = vld [vmem:[%s5527_s2 + $0x50] sm:$0xff]  ;;  %s574_s28 = scalar_lea.vmem %s5545_s27, %s4060_s19  ;;  %s5133_s30 = sshll.u32 %s5548_s25, 2  ;;  %vm1469_vm4 = vcmask 1043456   ;;  %vm2136_vm5 = vcmask 588800  }
  0x10   : > { %4259 = vmatpush3.msra.mxu0 %v604_v1  ;;  %4279 = vmatprep.subr.mxu1 %v3919_v2  ;;  %v601_v7 = vld [vmem:[%s5527_s2 + $0x20] sm:$0xff]  ;;  %v600_v9 = vld [vmem:[%s5527_s2 + $0x18] sm:$0xff]  ;;  %v599_v11 = vld [vmem:[%s5527_s2 + $0x10] sm:$0xff]  ;;  %s578_s19 = scalar_lea.vmem %s5546_s20, %s5133_s30  ;;  %s582_s25 = scalar_lea.vmem %s5539_s14, %s5133_s30  ;;  %vm2942_vm6 = vcmask 130052   ;;  %vm3621_vm7 = vcmask 293888  }
  0x11   : > { %4260 = vmatprep.subr.mxu0 %v603_v3  ;;  %4280 = vmatpush3.msra.mxu1 %v3919_v2  ;;  %v3914_v12 = vld [vmem:[%s5527_s2 + $0x48] sm:$0xff]  ;;  %v3913_v14 = vld [vmem:[%s5527_s2 + $0x40] sm:$0xff]  ;;  %v3940_v18 = vld [vmem:[%s5527_s2 + $0xf8] sm:$0xff]  ;;  %s586_s22 = scalar_lea.vmem %s5540_s15, %s5133_s30  ;;  %s590_s0 = scalar_lea.vmem %s5541_s16, %s5133_s30 }
  0x12   : > { %4261 = vmatpush3.msra.mxu0 %v603_v3  ;;  %4281 = vmatprep.subr.mxu1 %v3918_v4  ;;  %v598_v13 = vld [vmem:[%s5527_s2 + $0x8] sm:$0xff]  ;;  %v4865_v15 = vld [vmem:[%s574_s28] sm:$0xff]  ;;  %v3930_v19 = vld [vmem:[%s5527_s2 + $0xb8] sm:$0xff]  ;;  %s594_s20 = scalar_lea.vmem %s5542_s17, %s5133_s30 }
  0x13   : > { %4262 = vmatprep.subr.mxu0 %v602_v5  ;;  %4282 = vmatpush3.msra.mxu1 %v3918_v4  ;;  %v597_v16 = vld [vmem:[%s5527_s2] sm:$0xff]  ;;  %v4870_v17 = vld [vmem:[%s574_s28 + $0x8] sm:$0xff]  ;;  %v3939_v20 = vld [vmem:[%s5527_s2 + $0xf0] sm:$0xff] }
  0x14   : > { %4263 = vmatpush3.msra.mxu0 %v602_v5  ;;  %4283 = vmatprep.subr.mxu1 %v3917_v6  ;;  %v3929_v21 = vld [vmem:[%s5527_s2 + $0xb0] sm:$0xff]  ;;  %v3938_v22 = vld [vmem:[%s5527_s2 + $0xe8] sm:$0xff]  ;;  %v3937_v24 = vld [vmem:[%s5527_s2 + $0xe0] sm:$0xff] }
  0x15   : > { %4264 = vmatprep.subr.mxu0 %v601_v7  ;;  %4284 = vmatpush3.msra.mxu1 %v3917_v6  ;;  %v3928_v23 = vld [vmem:[%s5527_s2 + $0xa8] sm:$0xff]  ;;  %v3927_v25 = vld [vmem:[%s5527_s2 + $0xa0] sm:$0xff]  ;;  %v3936_v26 = vld [vmem:[%s5527_s2 + $0xd8] sm:$0xff] }
  0x16   : > { %4265 = vmatpush3.msra.mxu0 %v601_v7  ;;  %4285 = vmatprep.subr.mxu1 %v3916_v8  ;;  %v3926_v27 = vld [vmem:[%s5527_s2 + $0x98] sm:$0xff]  ;;  %v3935_v28 = vld [vmem:[%s5527_s2 + $0xd0] sm:$0xff]  ;;  %v3934_v30 = vld [vmem:[%s5527_s2 + $0xc8] sm:$0xff] }
  0x17   : > { %4266 = vmatprep.subr.mxu0 %v600_v9  ;;  %4286 = vmatpush3.msra.mxu1 %v3916_v8  ;;  %v3925_v29 = vld [vmem:[%s5527_s2 + $0x90] sm:$0xff]  ;;  %v3924_v31 = vld [vmem:[%s5527_s2 + $0x88] sm:$0xff]  ;;  %v3933_v32 = vld [vmem:[%s5527_s2 + $0xc0] sm:$0xff] }
  0x18   : > { %4267 = vmatpush3.msra.mxu0 %v600_v9  ;;  %4287 = vmatprep.subr.mxu1 %v3915_v10  ;;  %v3923_v33 = vld [vmem:[%s5527_s2 + $0x80] sm:$0xff]  ;;  %v3960_v34 = vld [vmem:[%s5527_s2 + $0x178] sm:$0xff]  ;;  %v3959_v36 = vld [vmem:[%s5527_s2 + $0x170] sm:$0xff] }
  0x19   : > { %4268 = vmatprep.subr.mxu0 %v599_v11  ;;  %4288 = vmatpush3.msra.mxu1 %v3915_v10  ;;  %v3950_v35 = vld [vmem:[%s5527_s2 + $0x138] sm:$0xff]  ;;  %v3949_v37 = vld [vmem:[%s5527_s2 + $0x130] sm:$0xff]  ;;  %v3958_v38 = vld [vmem:[%s5527_s2 + $0x168] sm:$0xff]  ;;  %v4712_v10 = vmov 0.0  }
  0x1a   : > { %4269 = vmatpush3.msra.mxu0 %v599_v11  ;;  %4289 = vmatprep.subr.mxu1 %v3914_v12  ;;  %v3948_v39 = vld [vmem:[%s5527_s2 + $0x128] sm:$0xff]  ;;  %v3957_v40 = vld [vmem:[%s5527_s2 + $0x160] sm:$0xff]  ;;  %v3956_v42 = vld [vmem:[%s5527_s2 + $0x158] sm:$0xff] }
  0x1b   : > { %4270 = vmatprep.subr.mxu0 %v598_v13  ;;  %4290 = vmatpush3.msra.mxu1 %v3914_v12  ;;  %v3947_v41 = vld [vmem:[%s5527_s2 + $0x120] sm:$0xff]  ;;  %v3946_v43 = vld [vmem:[%s5527_s2 + $0x118] sm:$0xff]  ;;  %v3955_v44 = vld [vmem:[%s5527_s2 + $0x150] sm:$0xff] }
  0x1c   : > { %4271 = vmatpush3.msra.mxu0 %v598_v13  ;;  %4291 = vmatprep.subr.mxu1 %v3913_v14  ;;  %v3945_v45 = vld [vmem:[%s5527_s2 + $0x110] sm:$0xff]  ;;  %v3954_v46 = vld [vmem:[%s5527_s2 + $0x148] sm:$0xff]  ;;  %v3953_v48 = vld [vmem:[%s5527_s2 + $0x140] sm:$0xff] }
  0x1d   : > { %4293 = vmatprep.mubr.msk.f32.mxu1 %vm605_vm0, %v4865_v15  ;;  %4292 = vmatpush3.msra.mxu1 %v3913_v14  ;;  %v3944_v47 = vld [vmem:[%s5527_s2 + $0x108] sm:$0xff]  ;;  %v3943_v49 = vld [vmem:[%s5527_s2 + $0x100] sm:$0xff]  ;;  %v3980_v50 = vld [vmem:[%s5527_s2 + $0x1f8] sm:$0xff] }
  0x1e   : > { %4272 = vmatprep.subr.mxu0 %v597_v16  ;;  %4294 = vmatmul.mubr.msk.f32.vlgmr.msra.gmra.mxu1 %vm605_vm0, %v4870_v17  ;;  %v3970_v51 = vld [vmem:[%s5527_s2 + $0x1b8] sm:$0xff]  ;;  %v3979_v52 = vld [vmem:[%s5527_s2 + $0x1f0] sm:$0xff]  ;;  %v3978_v54 = vld [vmem:[%s5527_s2 + $0x1e8] sm:$0xff] }
  0x1f   : > { %4315 = vmatprep.subr.mxu1 %v3940_v18  ;;  %4273 = vmatpush3.msra.mxu0 %v597_v16  ;;  %v3969_v53 = vld [vmem:[%s5527_s2 + $0x1b0] sm:$0xff]  ;;  %v3968_v55 = vld [vmem:[%s5527_s2 + $0x1a8] sm:$0xff]  ;;  %v3977_v56 = vld [vmem:[%s5527_s2 + $0x1e0] sm:$0xff] }
  0x20   : > { %4316 = vmatpush3.msra.mxu1 %v3940_v18  ;;  %4274 = vmatprep.mubr.msk.f32.mxu0 %vm605_vm0, %v4865_v15  ;;  %v3967_v57 = vld [vmem:[%s5527_s2 + $0x1a0] sm:$0xff]  ;;  %v3976_v58 = vld [vmem:[%s5527_s2 + $0x1d8] sm:$0xff]  ;;  %v3975_v60 = vld [vmem:[%s5527_s2 + $0x1d0] sm:$0xff] }
  0x21   : > { %4296 = vmatprep.subr.mxu0 %v3930_v19  ;;  %4317 = vmatprep.subr.mxu1 %v3939_v20  ;;  %v3966_v59 = vld [vmem:[%s5527_s2 + $0x198] sm:$0xff]  ;;  %v3965_v61 = vld [vmem:[%s5527_s2 + $0x190] sm:$0xff]  ;;  %v3974_v62 = vld [vmem:[%s5527_s2 + $0x1c8] sm:$0xff] }
  0x22   : > { %4275 = vmatmul.mubr.msk.f32.vlgmr.msra.gmra.mxu0 %vm605_vm0, %v4870_v17  ;;  %4318 = vmatpush3.msra.mxu1 %v3939_v20  ;;  %v3964_v63 = vld [vmem:[%s5527_s2 + $0x188] sm:$0xff]  ;;  %v3973_v0 = vld [vmem:[%s5527_s2 + $0x1c0] sm:$0xff]  ;;  %v3990_v2 = vld [vmem:[%s5527_s2 + $0x238] sm:$0xff] }
  0x23   : > { %4297 = vmatpush3.msra.mxu0 %v3930_v19  ;;  %4319 = vmatprep.subr.mxu1 %v3938_v22  ;;  %v3963_v1 = vld [vmem:[%s5527_s2 + $0x180] sm:$0xff]  ;;  %v3989_v3 = vld [vmem:[%s5527_s2 + $0x230] sm:$0xff]  ;;  %v3988_v4 = vld [vmem:[%s5527_s2 + $0x228] sm:$0xff] }
  0x24   : > { %4298 = vmatprep.subr.mxu0 %v3929_v21  ;;  %4320 = vmatpush3.msra.mxu1 %v3938_v22  ;;  %v3987_v5 = vld [vmem:[%s5527_s2 + $0x220] sm:$0xff]  ;;  %v3986_v6 = vld [vmem:[%s5527_s2 + $0x218] sm:$0xff]  ;;  %v3985_v7 = vld [vmem:[%s5527_s2 + $0x210] sm:$0xff] }
  0x25   : > { %4299 = vmatpush3.msra.mxu0 %v3929_v21  ;;  %4321 = vmatprep.subr.mxu1 %v3937_v24  ;;  %v3984_v8 = vld [vmem:[%s5527_s2 + $0x208] sm:$0xff]  ;;  %v3983_v9 = vld [vmem:[%s5527_s2 + $0x200] sm:$0xff] }
  0x26   : > { %4300 = vmatprep.subr.mxu0 %v3928_v23  ;;  %4322 = vmatpush3.msra.mxu1 %v3937_v24  ;;  %v1359_v11 = vld [vmem:[%s5530_s5] sm:$0xff] }
  0x27   : > { %4301 = vmatpush3.msra.mxu0 %v3928_v23  ;;  %4323 = vmatprep.subr.mxu1 %v3936_v26  ;;  %v1361_v12 = vcombine.high %v1359_v11, %v1359_v11 }
  0x28   : > { %4302 = vmatprep.subr.mxu0 %v3927_v25  ;;  %4324 = vmatpush3.msra.mxu1 %v3936_v26 }
  0x29   : > { %4303 = vmatpush3.msra.mxu0 %v3927_v25  ;;  %4325 = vmatprep.subr.mxu1 %v3935_v28 }
  0x2a   : > { %4304 = vmatprep.subr.mxu0 %v3926_v27  ;;  %4326 = vmatpush3.msra.mxu1 %v3935_v28 }
  0x2b   : > { %4305 = vmatpush3.msra.mxu0 %v3926_v27  ;;  %4327 = vmatprep.subr.mxu1 %v3934_v30 }
  0x2c   : > { %4306 = vmatprep.subr.mxu0 %v3925_v29  ;;  %4328 = vmatpush3.msra.mxu1 %v3934_v30 }
  0x2d   : > { %4307 = vmatpush3.msra.mxu0 %v3925_v29  ;;  %4329 = vmatprep.subr.mxu1 %v3933_v32 }
  0x2e   : > { %4308 = vmatprep.subr.mxu0 %v3924_v31  ;;  %4330 = vmatpush3.msra.mxu1 %v3933_v32 }
  0x2f   : > { %4309 = vmatpush3.msra.mxu0 %v3924_v31  ;;  %4331 = vmatprep.mubr.msk.f32.mxu1 %vm605_vm0, %v4865_v15 }
  0x30   : > { %4310 = vmatprep.subr.mxu0 %v3923_v33  ;;  %4332 = vmatmul.mubr.msk.f32.vlgmr.msra.gmra.mxu1 %vm605_vm0, %v4870_v17 }
  0x31   : > { %4353 = vmatprep.subr.mxu1 %v3960_v34  ;;  %4311 = vmatpush3.msra.mxu0 %v3923_v33 }
  0x32   : > { %4354 = vmatpush3.msra.mxu1 %v3960_v34  ;;  %4312 = vmatprep.mubr.msk.f32.mxu0 %vm605_vm0, %v4865_v15  ;;  %v1435_v34 = vld [vmem:[%s5531_s6] sm:$0xf] }
  0x33   : > { %4334 = vmatprep.subr.mxu0 %v3950_v35  ;;  %4355 = vmatprep.subr.mxu1 %v3959_v36 }
  0x34   : > { %4313 = vmatmul.mubr.msk.f32.vlgmr.msra.gmra.mxu0 %vm605_vm0, %v4870_v17  ;;  %4356 = vmatpush3.msra.mxu1 %v3959_v36  ;;  %v4714_v36 = vmov 1  }
  0x35   : > { %4335 = vmatpush3.msra.mxu0 %v3950_v35  ;;  %4357 = vmatprep.subr.mxu1 %v3958_v38  ;;  %v4713_v35 = vmov 0  }
  0x36   : > { %4336 = vmatprep.subr.mxu0 %v3949_v37  ;;  %4358 = vmatpush3.msra.mxu1 %v3958_v38 }
  0x37   : > { %4337 = vmatpush3.msra.mxu0 %v3949_v37  ;;  %4359 = vmatprep.subr.mxu1 %v3957_v40 }
  0x38   : > { %4338 = vmatprep.subr.mxu0 %v3948_v39  ;;  %4360 = vmatpush3.msra.mxu1 %v3957_v40 }
  0x39   : > { %4339 = vmatpush3.msra.mxu0 %v3948_v39  ;;  %4361 = vmatprep.subr.mxu1 %v3956_v42 }
  0x3a   : > { %4340 = vmatprep.subr.mxu0 %v3947_v41  ;;  %4362 = vmatpush3.msra.mxu1 %v3956_v42  ;;  %v1472_v42 = vld [vmem:[%s5528_s3 + $0x8] sm:$0xff] }
  0x3b   : > { %4341 = vmatpush3.msra.mxu0 %v3947_v41  ;;  %4363 = vmatprep.subr.mxu1 %v3955_v44 }
  0x3c   : > { %4342 = vmatprep.subr.mxu0 %v3946_v43  ;;  %4364 = vmatpush3.msra.mxu1 %v3955_v44  ;;  %v1471_v44 = vld [vmem:[%s5528_s3] sm:$0xff] }
  0x3d   : > { %4343 = vmatpush3.msra.mxu0 %v3946_v43  ;;  %4365 = vmatprep.subr.mxu1 %v3954_v46  ;;  %v5112_v43 = vld [vmem:[%s5528_s3 + $0x88] sm:$0xff] }
  0x3e   : > { %4344 = vmatprep.subr.mxu0 %v3945_v45  ;;  %4366 = vmatpush3.msra.mxu1 %v3954_v46 }
  0x3f   : > { %4345 = vmatpush3.msra.mxu0 %v3945_v45  ;;  %4367 = vmatprep.subr.mxu1 %v3953_v48  ;;  %v5123_v45 = vld [vmem:[%s5528_s3 + $0x80] sm:$0xff] }
  0x40   : > { %4346 = vmatprep.subr.mxu0 %v3944_v47  ;;  %4368 = vmatpush3.msra.mxu1 %v3953_v48 }
  0x41   : > { %4347 = vmatpush3.msra.mxu0 %v3944_v47  ;;  %4369 = vmatprep.mubr.msk.f32.mxu1 %vm605_vm0, %v4865_v15 }
  0x42   : > { %4348 = vmatprep.subr.mxu0 %v3943_v49  ;;  %4370 = vmatmul.mubr.msk.f32.vlgmr.msra.gmra.mxu1 %vm605_vm0, %v4870_v17 }
  0x43   : > { %4391 = vmatprep.subr.mxu1 %v3980_v50  ;;  %4349 = vmatpush3.msra.mxu0 %v3943_v49 }
  0x44   : > { %4392 = vmatpush3.msra.mxu1 %v3980_v50  ;;  %4350 = vmatprep.mubr.msk.f32.mxu0 %vm605_vm0, %v4865_v15 }
  0x45   : > { %4372 = vmatprep.subr.mxu0 %v3970_v51  ;;  %4393 = vmatprep.subr.mxu1 %v3979_v52 }
  0x46   : > { %4351 = vmatmul.mubr.msk.f32.vlgmr.msra.gmra.mxu0 %vm605_vm0, %v4870_v17  ;;  %4394 = vmatpush3.msra.mxu1 %v3979_v52 }
  0x47   : > { %4373 = vmatpush3.msra.mxu0 %v3970_v51  ;;  %4395 = vmatprep.subr.mxu1 %v3978_v54 }
  0x48   : > { %4374 = vmatprep.subr.mxu0 %v3969_v53  ;;  %4396 = vmatpush3.msra.mxu1 %v3978_v54 }
  0x49   : > { %4375 = vmatpush3.msra.mxu0 %v3969_v53  ;;  %4397 = vmatprep.subr.mxu1 %v3977_v56  ;;  %v5139_v53 = vld [vmem:[%s578_s19] sm:$0xf] }
  0x4a   : > { %4376 = vmatprep.subr.mxu0 %v3968_v55  ;;  %4398 = vmatpush3.msra.mxu1 %v3977_v56  ;;  %v1467_v56 = vrot.slane %v5139_v53, 4 }
  0x4b   : > { %4377 = vmatpush3.msra.mxu0 %v3968_v55  ;;  %4399 = vmatprep.subr.mxu1 %v3976_v58 }
  0x4c   : > { %4378 = vmatprep.subr.mxu0 %v3967_v57  ;;  %4400 = vmatpush3.msra.mxu1 %v3976_v58  ;;  %v5151_v58 = vld [vmem:[%s5528_s3 + $0x18] sm:$0xff] }
  0x4d   : > { %4379 = vmatpush3.msra.mxu0 %v3967_v57  ;;  %4401 = vmatprep.subr.mxu1 %v3975_v60 }
  0x4e   : > { %4380 = vmatprep.subr.mxu0 %v3966_v59  ;;  %4402 = vmatpush3.msra.mxu1 %v3975_v60  ;;  %v5164_v60 = vld [vmem:[%s5528_s3 + $0x10] sm:$0xff] }
  0x4f   : > { %4381 = vmatpush3.msra.mxu0 %v3966_v59  ;;  %4403 = vmatprep.subr.mxu1 %v3974_v62 }
  0x50   : > { %4382 = vmatprep.subr.mxu0 %v3965_v61  ;;  %4404 = vmatpush3.msra.mxu1 %v3974_v62  ;;  %v5182_v62 = vld [vmem:[%s5528_s3 + $0x20] sm:$0xff] }
  0x51   : > { %4383 = vmatpush3.msra.mxu0 %v3965_v61  ;;  %4405 = vmatprep.subr.mxu1 %v3973_v0  ;;  %v5173_v61 = vld [vmem:[%s5528_s3 + $0x28] sm:$0xff] }
  0x52   : > { %4384 = vmatprep.subr.mxu0 %v3964_v63  ;;  %4406 = vmatpush3.msra.mxu1 %v3973_v0  ;;  %v5201_v0 = vld [vmem:[%s5528_s3 + $0x30] sm:$0xff] }
  0x53   : > { %4385 = vmatpush3.msra.mxu0 %v3964_v63  ;;  %4407 = vmatprep.mubr.msk.f32.mxu1 %vm605_vm0, %v4865_v15  ;;  %v5191_v63 = vld [vmem:[%s5528_s3 + $0x38] sm:$0xff] }
  0x54   : > { %4386 = vmatprep.subr.mxu0 %v3963_v1  ;;  %4408 = vmatmul.mubr.msk.f32.vlgmr.msra.gmra.mxu1 %vm605_vm0, %v4870_v17 }
  0x55   : > { %4387 = vmatpush3.msra.mxu0 %v3963_v1  ;;  %4388 = vmatprep.mubr.msk.f32.mxu0 %vm605_vm0, %v4865_v15  ;;  %v5210_v1 = vld [vmem:[%s5528_s3 + $0x48] sm:$0xff] }
  0x56   : > { %4410 = vmatprep.subr.mxu0 %v3990_v2  ;;  %4389 = vmatmul.mubr.msk.f32.vlgmr.msra.gmra.mxu0 %vm605_vm0, %v4870_v17 }
  0x57   : > { %4411 = vmatpush3.msra.mxu0 %v3990_v2  ;;  %4426 = vmatprep.mubr.msk.f32.mxu0 %vm605_vm0, %v4865_v15  ;;  %v5219_v2 = vld [vmem:[%s5528_s3 + $0x40] sm:$0xff] }
  0x58   : > { %4412 = vmatprep.subr.mxu0 %v3989_v3  ;;  %1365 = vmatprep.subr.mxu1 %v4712_v10 }
  0x59   : > { %4413 = vmatpush3.msra.mxu0 %v3989_v3  ;;  %3993 = vmatprep.mubr.msk.f32.mxu1 %vm1362_vm1, %v1361_v12  ;;  %v5228_v3 = vld [vmem:[%s5528_s3 + $0x58] sm:$0xff]  ;;  %v3711_v12 = vld [vmem:[%s5537_s12] sm:$0xf] }
  0x5a   : > { %4414 = vmatprep.subr.mxu0 %v3988_v4  ;;  %4685 = vset.pattern.permute.xlu1 %v4713_v35 }
  0x5b   : > { %4415 = vmatpush3.msra.mxu0 %v3988_v4  ;;  %4687 = vset.pattern.permute.xlu0 %v4713_v35  ;;  %v5236_v4 = vld [vmem:[%s5528_s3 + $0x50] sm:$0xff] }
  0x5c   : > { %4416 = vmatprep.subr.mxu0 %v3987_v5  ;;  %1453 = vperm.xlu1 %4685, %v1435_v34  }
  0x5d   : > { %4417 = vmatpush3.msra.mxu0 %v3987_v5  ;;  %v5245_v5 = vld [vmem:[%s5528_s3 + $0x68] sm:$0xff] }
  0x5e   : > { %4418 = vmatprep.subr.mxu0 %v3986_v6 }
  0x5f   : > { %4419 = vmatpush3.msra.mxu0 %v3986_v6  ;;  %v5253_v6 = vld [vmem:[%s5528_s3 + $0x60] sm:$0xff] }
  0x60   : > { %4420 = vmatprep.subr.mxu0 %v3985_v7  ;;  %4686 = vset.pattern.permute.xlu1 %v4714_v36 }
  0x61   : > { %4421 = vmatpush3.msra.mxu0 %v3985_v7  ;;  %1458 = vperm.xlu1 %4686, %v1435_v34   ;;  %v5262_v7 = vld [vmem:[%s5528_s3 + $0x78] sm:$0xff] }
  0x62   : > { %4422 = vmatprep.subr.mxu0 %v3984_v8 }
  0x63   : > { %4423 = vmatpush3.msra.mxu0 %v3984_v8  ;;  %v5270_v8 = vld [vmem:[%s5528_s3 + $0x70] sm:$0xff] }
  0x64   : > { %4424 = vmatprep.subr.mxu0 %v3983_v9 }
  0x65   : > { %4425 = vmatpush3.msra.mxu0 %v3983_v9  ;;  %4688 = vset.pattern.permute.xlu1 %v4713_v35  ;;  %v2130_v9 = vld [vmem:[%s5533_s8] sm:$0xff] }
  0x66   : > { %4427 = vmatmul.mubr.msk.f32.vlgmr.msra.gmra.mxu0 %vm605_vm0, %v4870_v17  ;;  %4429 = vmatprep.subr.mxu0 %v4712_v10 }
  0x67   : > { %4430 = vmatpush3.msra.mxu0 %v1472_v42  ;;  %4433 = vmatprep.mubr.msk.f32.mxu0 %vm4715_vm3, %v4712_v10 }
  0x68   : > { %4431 = vmatprep.subr.mxu0 %v4712_v10 }
  0x69   : > { %4432 = vmatpush3.msra.mxu0 %v1471_v44 }
  0x6a   : > { %4436 = vmatprep.subr.mxu0 %v4712_v10 }
  0xd7   : > { %v1454_v49 = vpop.permute.xlu1 %1453 }
  0xdc   : > { %v1459_v52 = vpop.permute.xlu1 %1458 }
  0xde   : > { %v4295_v13 = vpop.f32.mrf.mxu1 }
  0xe0   : > { %v762_v15 = vpop.f32.mrf.mxu1 }
  0xe2   : > { %v4276_v14 = vpop.f32.mrf.mxu0 }
  0xe4   : > { %v678_v16 = vpop.f32.mrf.mxu0 }
  0xf0   : > { %v4333_v18 = vpop.f32.mrf.mxu1 }
  0xf2   : > { %v930_v17 = vpop.f32.mrf.mxu1 }
  0xf4   : > { %v4314_v19 = vpop.f32.mrf.mxu0 }
  0xf6   : > { %v846_v20 = vpop.f32.mrf.mxu0 }
 0x102   : > { %v4371_v21 = vpop.f32.mrf.mxu1 }
 0x104   : > { %v1098_v23 = vpop.f32.mrf.mxu1 }
 0x106   : > { %v4352_v22 = vpop.f32.mrf.mxu0 }
 0x108   : > { %v1014_v24 = vpop.f32.mrf.mxu0 }
 0x114   : > { %v4409_v25 = vpop.f32.mrf.mxu1 }
 0x115   : > { %1366 = vmatpush1.msra.mxu1 %v4409_v25 }
 0x116   : > { %v4390_v26 = vpop.f32.mrf.mxu0  ;;  %v1266_v27 = vpop.f32.mrf.mxu1  ;;  %1367 = vmatprep.subr.mxu1 %v4712_v10 }
 0x117   : > { %1368 = vmatpush1.msra.mxu1 %v1266_v27 }
 0x118   : > { %1369 = vmatprep.subr.mxu1 %v4712_v10  ;;  %v1182_v28 = vpop.f32.mrf.mxu0 }
 0x119   : > { %1370 = vmatpush1.msra.mxu1 %v4390_v26 }
 0x11a   : > { %1371 = vmatprep.subr.mxu1 %v4712_v10 }
 0x11b   : > { %1372 = vmatpush1.msra.mxu1 %v1182_v28 }
 0x11c   : > { %1373 = vmatprep.subr.mxu1 %v4712_v10 }
 0x11d   : > { %1374 = vmatpush1.msra.mxu1 %v4371_v21 }
 0x11e   : > { %1375 = vmatprep.subr.mxu1 %v4712_v10 }
 0x11f   : > { %1376 = vmatpush1.msra.mxu1 %v1098_v23 }
 0x120   : > { %1377 = vmatprep.subr.mxu1 %v4712_v10 }
 0x121   : > { %1378 = vmatpush1.msra.mxu1 %v4352_v22 }
 0x122   : > { %1379 = vmatprep.subr.mxu1 %v4712_v10 }
 0x123   : > { %1380 = vmatpush1.msra.mxu1 %v1014_v24 }
 0x124   : > { %1381 = vmatprep.subr.mxu1 %v4712_v10 }
 0x125   : > { %1382 = vmatpush1.msra.mxu1 %v4333_v18 }
 0x126   : > { %1383 = vmatprep.subr.mxu1 %v4712_v10  ;;  %v4428_v29 = vpop.f32.mrf.mxu0 }
 0x127   : > { %1384 = vmatpush1.msra.mxu1 %v930_v17 }
 0x128   : > { %1385 = vmatprep.subr.mxu1 %v4712_v10  ;;  %v1350_v30 = vpop.f32.mrf.mxu0 }
 0x129   : > { %1386 = vmatpush1.msra.mxu1 %v4314_v19 }
 0x12a   : > { %1387 = vmatprep.subr.mxu1 %v4712_v10 }
 0x12b   : > { %1388 = vmatpush1.msra.mxu1 %v846_v20 }
 0x12c   : > { %1389 = vmatprep.subr.mxu1 %v4712_v10 }
 0x12d   : > { %1390 = vmatpush1.msra.mxu1 %v4295_v13 }
 0x12e   : > { %1391 = vmatprep.subr.mxu1 %v4712_v10 }
 0x12f   : > { %1392 = vmatpush1.msra.mxu1 %v762_v15 }
 0x130   : > { %1393 = vmatprep.subr.mxu1 %v4712_v10 }
 0x131   : > { %1394 = vmatpush1.msra.mxu1 %v4276_v14 }
 0x132   : > { %1395 = vmatprep.subr.mxu1 %v4712_v10 }
 0x133   : > { %1396 = vmatpush1.msra.mxu1 %v678_v16 }
 0x134   : > { %1425 = vmatprep.subr.mxu1 %v4712_v10 }
 0x135   : > { %1426 = vmatpush2.msra.mxu1 %v4428_v29 }
 0x136   : > { %1427 = vmatprep.subr.mxu1 %v4712_v10 }
 0x137   : > { %1428 = vmatpush2.msra.mxu1 %v1350_v30 }
 0x138   : > { %1430 = vmatmul.mubr.f32.vlgmr.msra.gmra.mxu1 %v1359_v11  ;;  %4485 = vmatprep.subr.mxu1 %v4712_v10  ;;  %v5287_v11 = vld [vmem:[%s5538_s13] sm:$0xf] }
 0x139   : > { %4486 = vmatpush3.msra.mxu1 %v5112_v43  ;;  %4489 = vmatprep.mubr.msk.f32.mxu1 %vm4715_vm3, %v4712_v10 }
 0x13a   : > { %4487 = vmatprep.subr.mxu1 %v4712_v10 }
 0x13b   : > { %4488 = vmatpush3.msra.mxu1 %v5123_v45 }
 0x13c   : > { %4513 = vmatprep.subr.mxu1 %v4712_v10 }
 0x1f8   : > { %v1431_v31 = vpop.f32.mrf.mxu1 }
 0x1f9   : > { %v1437_v32 = vsel %vm1436_vm2, %v1431_v31, 0.0 }
 0x1fa   : > { %1438 = vadd.xlane.f32.xlu0 %v1437_v32  ;;  %v1433_v33 = vpop.f32.mrf.mxu1 }
 0x283   : > { %v1439_v37 = vpop.xlane.xlu0 %1438 }
 0x284   : > { %v1441_v38 = vmul.f32 0.0625, %v1439_v37 }
 0x286   : > { %v1442_v39 = vsub.f32 %v1431_v31, %v1441_v38  ;;  %v1465_v31 = vld [vmem:[%s5532_s7] sm:$0xff] }
 0x288   : > { %v1443_v40 = vmul.f32 %v1442_v39, %v1442_v39 }
 0x28a   : > { %v1444_v41 = vsel %vm1436_vm2, %v1443_v40, 0.0 }
 0x28b   : > { %1445 = vadd.xlane.f32.xlu0 %v1444_v41 }
 0x2a1   : > { %2133 = vperm.xlu0 %4687, %v2130_v9  }
 0x2a5   : > { %3728 = vperm.xlu0 %4687, %v5287_v11  }
 0x2a9   : > { %3715 = vperm.xlu0 %4687, %v3711_v12  }
 0x2ad   : > { %4690 = vset.pattern.permute.xlu0 %v4714_v36 }
 0x2ae   : > { %3720 = vperm.xlu0 %4690, %v3711_v12  }
 0x314   : > { %v1446_v46 = vpop.xlane.xlu0 %1445 }
 0x315   : > { %v1447_v47 = vmul.f32 0.0625, %v1446_v46  ;;  %v2855_v46 = vld [vmem:[%s5535_s10] sm:$0xf] }
 0x316   : > { %2858 = vperm.xlu1 %4688, %v2855_v46  }
 0x317   : > { %v1448_v48 = vadd.f32 1e-05, %v1447_v47 }
 0x319   : > { %4692 = vrsqrt.f32 %v1448_v48 }
 0x31a   : > { %4689 = vset.pattern.permute.xlu1 %v4714_v36  ;;  %v2216_v36 = vld [vmem:[%s5534_s9] sm:$0xf] }
 0x31c   : > { %v2134_v32 = vpop.permute.xlu0 %2133 }
 0x326   : > { %v4693_v50 = vpop.eup %4692 }
 0x327   : > { %v1450_v51 = vmul.f32 %v4693_v50, %v1442_v39 }
 0x329   : > { %v1456_v54 = vmul.f32 %v1454_v49, %v1450_v51 }
 0x32b   : > { %v1461_v55 = vadd.f32 %v1459_v52, %v1456_v54 }
 0x32d   : > { %v5146_v57 = vmax.f32 %v1461_v55, 0.0 }
 0x32f   : > { %1463 = vst.msk [vmem:[%s582_s25] sm:$0xf] %vm1436_vm2, %v5146_v57  ;;  %v1470_v59 = vsel %vm1469_vm4, %v5146_v57, %v1467_v56 }
 0x330   : > { %4434 = vmatmul.mubr.msk.f32.vlgmr.msra.gmra.mxu0 %vm1362_vm1, %v1470_v59  ;;  %4490 = vmatmul.mubr.msk.f32.vlgmr.msra.gmra.mxu1 %vm1362_vm1, %v1470_v59 }
 0x331   : > { %4437 = vmatpush3.msra.mxu0 %v5151_v58  ;;  %4440 = vmatprep.mubr.msk.f32.mxu0 %vm4715_vm3, %v4712_v10 }
 0x332   : > { %4438 = vmatprep.subr.mxu0 %v4712_v10  ;;  %4514 = vmatpush3.msra.mxu1 %v1472_v42 }
 0x333   : > { %4439 = vmatpush3.msra.mxu0 %v5164_v60  ;;  %4515 = vmatprep.subr.mxu1 %v4712_v10 }
 0x334   : > { %4443 = vmatprep.subr.mxu0 %v4712_v10  ;;  %4441 = vmatmul.mubr.msk.f32.vlgmr.msra.gmra.mxu0 %vm1362_vm1, %v1470_v59 }
 0x335   : > { %4444 = vmatpush3.msra.mxu0 %v5173_v61  ;;  %4447 = vmatprep.mubr.msk.f32.mxu0 %vm4715_vm3, %v4712_v10 }
 0x336   : > { %4445 = vmatprep.subr.mxu0 %v4712_v10  ;;  %4516 = vmatpush3.msra.mxu1 %v1471_v44 }
 0x337   : > { %4446 = vmatpush3.msra.mxu0 %v5182_v62  ;;  %4517 = vmatprep.mubr.msk.f32.mxu1 %vm4715_vm3, %v4712_v10 }
 0x338   : > { %4450 = vmatprep.subr.mxu0 %v4712_v10  ;;  %4448 = vmatmul.mubr.msk.f32.vlgmr.msra.gmra.mxu0 %vm1362_vm1, %v1470_v59 }
 0x339   : > { %4451 = vmatpush3.msra.mxu0 %v5191_v63  ;;  %4454 = vmatprep.mubr.msk.f32.mxu0 %vm4715_vm3, %v4712_v10 }
 0x33a   : > { %4452 = vmatprep.subr.mxu0 %v4712_v10  ;;  %4520 = vmatprep.subr.mxu1 %v4712_v10 }
 0x33b   : > { %4453 = vmatpush3.msra.mxu0 %v5201_v0 }
 0x33c   : > { %4457 = vmatprep.subr.mxu0 %v4712_v10  ;;  %4455 = vmatmul.mubr.msk.f32.vlgmr.msra.gmra.mxu0 %vm1362_vm1, %v1470_v59 }
 0x33d   : > { %4458 = vmatpush3.msra.mxu0 %v5210_v1  ;;  %4461 = vmatprep.mubr.msk.f32.mxu0 %vm4715_vm3, %v4712_v10 }
 0x33e   : > { %4459 = vmatprep.subr.mxu0 %v4712_v10 }
 0x33f   : > { %4460 = vmatpush3.msra.mxu0 %v5219_v2 }
 0x340   : > { %4464 = vmatprep.subr.mxu0 %v4712_v10  ;;  %4462 = vmatmul.mubr.msk.f32.vlgmr.msra.gmra.mxu0 %vm1362_vm1, %v1470_v59 }
 0x341   : > { %4465 = vmatpush3.msra.mxu0 %v5228_v3  ;;  %4468 = vmatprep.mubr.msk.f32.mxu0 %vm4715_vm3, %v4712_v10 }
 0x342   : > { %4466 = vmatprep.subr.mxu0 %v4712_v10 }
 0x343   : > { %4467 = vmatpush3.msra.mxu0 %v5236_v4 }
 0x344   : > { %4471 = vmatprep.subr.mxu0 %v4712_v10  ;;  %4469 = vmatmul.mubr.msk.f32.vlgmr.msra.gmra.mxu0 %vm1362_vm1, %v1470_v59 }
 0x345   : > { %4472 = vmatpush3.msra.mxu0 %v5245_v5  ;;  %4475 = vmatprep.mubr.msk.f32.mxu0 %vm4715_vm3, %v4712_v10 }
 0x346   : > { %4473 = vmatprep.subr.mxu0 %v4712_v10 }
 0x347   : > { %4474 = vmatpush3.msra.mxu0 %v5253_v6 }
 0x348   : > { %4478 = vmatprep.subr.mxu0 %v4712_v10  ;;  %4476 = vmatmul.mubr.msk.f32.vlgmr.msra.gmra.mxu0 %vm1362_vm1, %v1470_v59 }
 0x349   : > { %4479 = vmatpush3.msra.mxu0 %v5262_v7  ;;  %4482 = vmatprep.mubr.msk.f32.mxu0 %vm4715_vm3, %v4712_v10 }
 0x34a   : > { %4480 = vmatprep.subr.mxu0 %v4712_v10 }
 0x34b   : > { %4481 = vmatpush3.msra.mxu0 %v5270_v8 }
 0x34c   : > { %4483 = vmatmul.mubr.msk.f32.vlgmr.msra.gmra.mxu0 %vm1362_vm1, %v1470_v59  ;;  %4492 = vmatprep.subr.mxu0 %v4712_v10 }
 0x34d   : > { %4510 = vmatprep.mubr.msk.f32.mxu0 %vm4715_vm3, %v4712_v10 }
 0x3f0   : > { %v1542_v13 = vpop.f32.mrf.mxu0  ;;  %v2126_v14 = vpop.f32.mrf.mxu1 }
 0x3f1   : > { %4493 = vmatpush3.msra.mxu0 %v2126_v14 }
 0x3f2   : > { %v4435_v15 = vpop.f32.mrf.mxu0  ;;  %v4491_v16 = vpop.f32.mrf.mxu1  ;;  %4494 = vmatprep.subr.mxu0 %v4712_v10 }
 0x3f4   : > { %v1615_v18 = vpop.f32.mrf.mxu0 }
 0x3f6   : > { %v4442_v19 = vpop.f32.mrf.mxu0 }
 0x3f7   : > { %v4033_v19 = vld [vmem:[%s5529_s4 + $0x18] sm:$0xff] }
 0x3f8   : > { %v1688_v17 = vpop.f32.mrf.mxu0 }
 0x3fa   : > { %v4449_v20 = vpop.f32.mrf.mxu0 }
 0x3fb   : > { %v4036_v20 = vld [vmem:[%s5529_s4 + $0x28] sm:$0xff] }
 0x3fc   : > { %v1761_v21 = vpop.f32.mrf.mxu0 }
 0x3fe   : > { %v4456_v22 = vpop.f32.mrf.mxu0 }
 0x3ff   : > { %v4035_v22 = vld [vmem:[%s5529_s4 + $0x20] sm:$0xff] }
 0x400   : > { %v1834_v23 = vpop.f32.mrf.mxu0 }
 0x402   : > { %v4463_v24 = vpop.f32.mrf.mxu0 }
 0x403   : > { %v4039_v24 = vld [vmem:[%s5529_s4 + $0x38] sm:$0xff] }
 0x404   : > { %v1907_v25 = vpop.f32.mrf.mxu0 }
 0x406   : > { %v4470_v26 = vpop.f32.mrf.mxu0 }
 0x407   : > { %v4045_v26 = vld [vmem:[%s5529_s4 + $0x58] sm:$0xff] }
 0x408   : > { %v1980_v27 = vpop.f32.mrf.mxu0 }
 0x40a   : > { %v4477_v28 = vpop.f32.mrf.mxu0 }
 0x40b   : > { %v4051_v28 = vld [vmem:[%s5529_s4 + $0x78] sm:$0xff] }
 0x40c   : > { %v2053_v29 = vpop.f32.mrf.mxu0 }
 0x40d   : > { %4495 = vmatpush3.msra.mxu0 %v2053_v29  ;;  %v4050_v29 = vld [vmem:[%s5529_s4 + $0x70] sm:$0xff] }
 0x40e   : > { %v4484_v30 = vpop.f32.mrf.mxu0  ;;  %4496 = vmatprep.subr.mxu0 %v4712_v10 }
 0x40f   : > { %4497 = vmatpush3.msra.mxu0 %v1980_v27  ;;  %v4044_v27 = vld [vmem:[%s5529_s4 + $0x50] sm:$0xff] }
 0x410   : > { %4498 = vmatprep.subr.mxu0 %v4712_v10 }
 0x411   : > { %4499 = vmatpush3.msra.mxu0 %v1907_v25  ;;  %v4038_v25 = vld [vmem:[%s5529_s4 + $0x30] sm:$0xff] }
 0x412   : > { %4500 = vmatprep.subr.mxu0 %v4712_v10 }
 0x413   : > { %4501 = vmatpush3.msra.mxu0 %v1834_v23  ;;  %v4053_v23 = vld [vmem:[%s5529_s4 + $0x80] sm:$0xff] }
 0x414   : > { %4502 = vmatprep.subr.mxu0 %v4712_v10 }
 0x415   : > { %4503 = vmatpush3.msra.mxu0 %v1761_v21  ;;  %v4054_v21 = vld [vmem:[%s5529_s4 + $0x88] sm:$0xff] }
 0x416   : > { %4504 = vmatprep.subr.mxu0 %v4712_v10 }
 0x417   : > { %4505 = vmatpush3.msra.mxu0 %v1688_v17  ;;  %v4048_v17 = vld [vmem:[%s5529_s4 + $0x68] sm:$0xff] }
 0x418   : > { %4506 = vmatprep.subr.mxu0 %v4712_v10 }
 0x419   : > { %4507 = vmatpush3.msra.mxu0 %v1615_v18 }
 0x41a   : > { %4508 = vmatprep.subr.mxu0 %v4712_v10 }
 0x41b   : > { %4509 = vmatpush3.msra.mxu0 %v1542_v13 }
 0x41c   : > { %4511 = vmatmul.mubr.msk.f32.vlgmr.msra.gmra.mxu0 %vm2136_vm5, %v1465_v31  ;;  %4548 = vmatprep.subr.mxu0 %v4712_v10 }
 0x41d   : > { %4549 = vmatpush3.msra.mxu0 %v5228_v3  ;;  %4552 = vmatprep.mubr.msk.f32.mxu0 %vm4715_vm3, %v4712_v10  ;;  %v2945_v3 = vld [vmem:[%s5529_s4] sm:$0xff] }
 0x41e   : > { %4550 = vmatprep.subr.mxu0 %v4712_v10 }
 0x41f   : > { %4551 = vmatpush3.msra.mxu0 %v5236_v4  ;;  %v4041_v4 = vld [vmem:[%s5529_s4 + $0x40] sm:$0xff] }
 0x420   : > { %4562 = vmatprep.subr.mxu0 %v4712_v10 }
 0x4dc   : > { %v2206_v33 = vpop.f32.mrf.mxu0 }
 0x4dd   : > { %v2207_v34 = vadd.f32 %v2206_v33, %v2134_v32 }
 0x4de   : > { %v4512_v35 = vpop.f32.mrf.mxu0 }
 0x4df   : > { %v4020_v37 = vmul.f32 -1.442695, %v2207_v34 }
 0x4e1   : > { %4694 = vpow2.f32 %v4020_v37 }
 0x4ee   : > { %v4695_v38 = vpop.eup %4694 }
 0x4ef   : > { %v2213_v39 = vadd.f32 1.0, %v4695_v38 }
 0x4f1   : > { %4696 = vrcp.f32 %v2213_v39 }
 0x4fe   : > { %v5313_v40 = vpop.eup %4696 }
 0x4ff   : > { %v2217_v41 = vmul.f32 %v5313_v40, %v5139_v53  ;;  %v2934_v9 = vsub.f32 1.0, %v5313_v40  ;;  %v4032_v53 = vld [vmem:[%s5529_s4 + $0x10] sm:$0xff] }
 0x501   : > { %v2219_v42 = vrot.slane %v2217_v41, 4  ;;  %v2935_v14 = vmul.f32 %v2934_v9, %v1467_v56  ;;  %v4047_v56 = vld [vmem:[%s5529_s4 + $0x60] sm:$0xff] }
 0x503   : > { %v2221_v44 = vsel %vm1469_vm4, %v5146_v57, %v2219_v42 }
 0x504   : > { %4518 = vmatmul.mubr.msk.f32.vlgmr.msra.gmra.mxu1 %vm1362_vm1, %v2221_v44  ;;  %4553 = vmatmul.mubr.msk.f32.vlgmr.msra.gmra.mxu0 %vm1362_vm1, %v2221_v44 }
 0x505   : > { %4521 = vmatpush3.msra.mxu1 %v5151_v58  ;;  %4563 = vmatpush3.msra.mxu0 %v5262_v7 }
 0x506   : > { %4522 = vmatprep.subr.mxu1 %v4712_v10  ;;  %4564 = vmatprep.subr.mxu0 %v4712_v10 }
 0x507   : > { %4523 = vmatpush3.msra.mxu1 %v5164_v60  ;;  %4524 = vmatprep.mubr.msk.f32.mxu1 %vm4715_vm3, %v4712_v10 }
 0x508   : > { %4527 = vmatprep.subr.mxu1 %v4712_v10  ;;  %4565 = vmatpush3.msra.mxu0 %v5270_v8 }
 0x509   : > { %4566 = vmatprep.mubr.msk.f32.mxu0 %vm4715_vm3, %v4712_v10  ;;  %4525 = vmatmul.mubr.msk.f32.vlgmr.msra.gmra.mxu1 %vm1362_vm1, %v2221_v44 }
 0x50a   : > { %4528 = vmatpush3.msra.mxu1 %v5173_v61  ;;  %4567 = vmatmul.mubr.msk.f32.vlgmr.msra.gmra.mxu0 %vm1362_vm1, %v2221_v44 }
 0x50b   : > { %4529 = vmatprep.subr.mxu1 %v4712_v10  ;;  %4531 = vmatprep.mubr.msk.f32.mxu1 %vm4715_vm3, %v4712_v10 }
 0x50c   : > { %4530 = vmatpush3.msra.mxu1 %v5182_v62  ;;  %4576 = vmatprep.subr.mxu0 %v4712_v10 }
 0x50d   : > { %4534 = vmatprep.subr.mxu1 %v4712_v10  ;;  %4532 = vmatmul.mubr.msk.f32.vlgmr.msra.gmra.mxu1 %vm1362_vm1, %v2221_v44 }
 0x50e   : > { %4535 = vmatpush3.msra.mxu1 %v5191_v63  ;;  %4538 = vmatprep.mubr.msk.f32.mxu1 %vm4715_vm3, %v4712_v10 }
 0x50f   : > { %4536 = vmatprep.subr.mxu1 %v4712_v10  ;;  %4594 = vmatprep.mubr.msk.f32.mxu0 %vm4715_vm3, %v4712_v10 }
 0x510   : > { %4537 = vmatpush3.msra.mxu1 %v5201_v0 }
 0x511   : > { %4541 = vmatprep.subr.mxu1 %v4712_v10  ;;  %4539 = vmatmul.mubr.msk.f32.vlgmr.msra.gmra.mxu1 %vm1362_vm1, %v2221_v44 }
 0x512   : > { %4542 = vmatpush3.msra.mxu1 %v5210_v1  ;;  %4545 = vmatprep.mubr.msk.f32.mxu1 %vm4715_vm3, %v4712_v10  ;;  %v2946_v1 = vld [vmem:[%s5529_s4 + $0x8] sm:$0xff] }
 0x513   : > { %4543 = vmatprep.subr.mxu1 %v4712_v10 }
 0x514   : > { %4544 = vmatpush3.msra.mxu1 %v5219_v2  ;;  %v4042_v2 = vld [vmem:[%s5529_s4 + $0x48] sm:$0xff] }
 0x515   : > { %4555 = vmatprep.subr.mxu1 %v4712_v10  ;;  %4546 = vmatmul.mubr.msk.f32.vlgmr.msra.gmra.mxu1 %vm1362_vm1, %v2221_v44 }
 0x516   : > { %4556 = vmatpush3.msra.mxu1 %v5245_v5  ;;  %4559 = vmatprep.mubr.msk.f32.mxu1 %vm4715_vm3, %v4712_v10  ;;  %v2859_v5 = vpop.permute.xlu1 %2858 }
 0x517   : > { %4557 = vmatprep.subr.mxu1 %v4712_v10 }
 0x518   : > { %4558 = vmatpush3.msra.mxu1 %v5253_v6 }
 0x519   : > { %4569 = vmatprep.subr.mxu1 %v4712_v10  ;;  %4560 = vmatmul.mubr.msk.f32.vlgmr.msra.gmra.mxu1 %vm1362_vm1, %v2221_v44 }
 0x51a   : > { %4570 = vmatpush3.msra.mxu1 %v5112_v43  ;;  %4573 = vmatprep.mubr.msk.f32.mxu1 %vm4715_vm3, %v4712_v10 }
 0x51b   : > { %4571 = vmatprep.subr.mxu1 %v4712_v10 }
 0x51c   : > { %4572 = vmatpush3.msra.mxu1 %v5123_v45 }
 0x51d   : > { %4574 = vmatmul.mubr.msk.f32.vlgmr.msra.gmra.mxu1 %vm1362_vm1, %v2221_v44  ;;  %4597 = vmatprep.subr.mxu1 %v4712_v10 }
 0x51e   : > { %4601 = vmatprep.mubr.msk.f32.mxu1 %vm4715_vm3, %v4712_v10  ;;  %4598 = vmatpush3.msra.mxu1 %v2946_v1 }
 0x51f   : > { %4599 = vmatprep.subr.mxu1 %v4712_v10 }
 0x520   : > { %4600 = vmatpush3.msra.mxu1 %v2945_v3 }
 0x521   : > { %4604 = vmatprep.subr.mxu1 %v4712_v10 }
 0x5c4   : > { %v2291_v43 = vpop.f32.mrf.mxu1  ;;  %v2641_v47 = vpop.f32.mrf.mxu0 }
 0x5c6   : > { %v4519_v48 = vpop.f32.mrf.mxu1  ;;  %v4554_v49 = vpop.f32.mrf.mxu0 }
 0x5c9   : > { %v2361_v50 = vpop.f32.mrf.mxu1 }
 0x5ca   : > { %v2781_v45 = vpop.f32.mrf.mxu0 }
 0x5cb   : > { %v4526_v51 = vpop.f32.mrf.mxu1 }
 0x5cc   : > { %v4568_v52 = vpop.f32.mrf.mxu0 }
 0x5cd   : > { %v2431_v54 = vpop.f32.mrf.mxu1 }
 0x5cf   : > { %v4533_v55 = vpop.f32.mrf.mxu1 }
 0x5d1   : > { %v2501_v57 = vpop.f32.mrf.mxu1 }
 0x5d3   : > { %v4540_v58 = vpop.f32.mrf.mxu1 }
 0x5d4   : > { %v2944_v58 = vld [vmem:[%s5536_s11] sm:$0xf] }
 0x5d5   : > { %v2571_v59 = vpop.f32.mrf.mxu1 }
 0x5d7   : > { %v4547_v60 = vpop.f32.mrf.mxu1 }
 0x5d9   : > { %v2711_v61 = vpop.f32.mrf.mxu1 }
 0x5db   : > { %v4561_v62 = vpop.f32.mrf.mxu1 }
 0x5dd   : > { %v2851_v63 = vpop.f32.mrf.mxu1 }
 0x5de   : > { %4577 = vmatpush3.msra.mxu0 %v2851_v63 }
 0x5df   : > { %v4575_v0 = vpop.f32.mrf.mxu1  ;;  %4578 = vmatprep.subr.mxu0 %v4712_v10 }
 0x5e0   : > { %4579 = vmatpush3.msra.mxu0 %v2781_v45 }
 0x5e1   : > { %4580 = vmatprep.subr.mxu0 %v4712_v10 }
 0x5e2   : > { %4581 = vmatpush3.msra.mxu0 %v2711_v61 }
 0x5e3   : > { %4582 = vmatprep.subr.mxu0 %v4712_v10 }
 0x5e4   : > { %4583 = vmatpush3.msra.mxu0 %v2641_v47 }
 0x5e5   : > { %4584 = vmatprep.subr.mxu0 %v4712_v10 }
 0x5e6   : > { %4585 = vmatpush3.msra.mxu0 %v2571_v59 }
 0x5e7   : > { %4586 = vmatprep.subr.mxu0 %v4712_v10 }
 0x5e8   : > { %4587 = vmatpush3.msra.mxu0 %v2501_v57 }
 0x5e9   : > { %4588 = vmatprep.subr.mxu0 %v4712_v10 }
 0x5ea   : > { %4589 = vmatpush3.msra.mxu0 %v2431_v54 }
 0x5eb   : > { %4590 = vmatprep.subr.mxu0 %v4712_v10 }
 0x5ec   : > { %4591 = vmatpush3.msra.mxu0 %v2361_v50 }
 0x5ed   : > { %4592 = vmatprep.subr.mxu0 %v4712_v10 }
 0x5ee   : > { %4593 = vmatpush3.msra.mxu0 %v2291_v43 }
 0x5ef   : > { %4595 = vmatmul.mubr.msk.f32.vlgmr.msra.gmra.mxu0 %vm2136_vm5, %v2216_v36  ;;  %4625 = vmatprep.subr.mxu0 %v4712_v10 }
 0x5f0   : > { %4629 = vmatprep.mubr.msk.f32.mxu0 %vm4715_vm3, %v4712_v10  ;;  %4626 = vmatpush3.msra.mxu0 %v4042_v2 }
 0x5f1   : > { %4627 = vmatprep.subr.mxu0 %v4712_v10 }
 0x5f2   : > { %4628 = vmatpush3.msra.mxu0 %v4041_v4 }
 0x5f3   : > { %4639 = vmatprep.subr.mxu0 %v4712_v10 }
 0x6af   : > { %v2930_v6 = vpop.f32.mrf.mxu0 }
 0x6b0   : > { %v2931_v7 = vadd.f32 %v2930_v6, %v2859_v5  ;;  %v3729_v5 = vpop.permute.xlu0 %3728 }
 0x6b1   : > { %v4596_v8 = vpop.f32.mrf.mxu0 }
 0x6b2   : > { %4698 = vtanh.f32 %v2931_v7 }
 0x6b4   : > { %v3716_v6 = vpop.permute.xlu0 %3715 }
 0x6b8   : > { %v3721_v9 = vpop.permute.xlu0 %3720 }
 0x6bf   : > { %v4699_v12 = vpop.eup %4698 }
 0x6c0   : > { %v2938_v13 = vrot.slane %v4699_v12, 4 }
 0x6c2   : > { %v2940_v15 = vmul.f32 %v5313_v40, %v2938_v13 }
 0x6c4   : > { %v2941_v16 = vadd.f32 %v2940_v15, %v2935_v14 }
 0x6c6   : > { %2943 = vst.msk [vmem:[%s586_s22 - $0x4] sm:$0xf0] %vm2942_vm6, %v2941_v16  ;;  %v2948_v18 = vrot.slane %v2941_v16, 4 }
 0x6c8   : > { %4602 = vmatmul.mubr.msk.f32.vlgmr.msra.gmra.mxu1 %vm1362_vm1, %v2948_v18  ;;  %4630 = vmatmul.mubr.msk.f32.vlgmr.msra.gmra.mxu0 %vm1362_vm1, %v2948_v18 }
 0x6c9   : > { %4605 = vmatpush3.msra.mxu1 %v4033_v19  ;;  %4640 = vmatpush3.msra.mxu0 %v4048_v17 }
 0x6ca   : > { %4606 = vmatprep.subr.mxu1 %v4712_v10  ;;  %4641 = vmatprep.subr.mxu0 %v4712_v10 }
 0x6cb   : > { %4607 = vmatpush3.msra.mxu1 %v4032_v53  ;;  %4608 = vmatprep.mubr.msk.f32.mxu1 %vm4715_vm3, %v4712_v10 }
 0x6cc   : > { %4611 = vmatprep.subr.mxu1 %v4712_v10  ;;  %4642 = vmatpush3.msra.mxu0 %v4047_v56 }
 0x6cd   : > { %4643 = vmatprep.mubr.msk.f32.mxu0 %vm4715_vm3, %v4712_v10  ;;  %4609 = vmatmul.mubr.msk.f32.vlgmr.msra.gmra.mxu1 %vm1362_vm1, %v2948_v18 }
 0x6ce   : > { %4612 = vmatpush3.msra.mxu1 %v4036_v20  ;;  %4644 = vmatmul.mubr.msk.f32.vlgmr.msra.gmra.mxu0 %vm1362_vm1, %v2948_v18 }
 0x6cf   : > { %4653 = vmatprep.subr.mxu0 %v4712_v10  ;;  %4613 = vmatprep.subr.mxu1 %v4712_v10 }
 0x6d0   : > { %4654 = vmatpush3.msra.mxu0 %v4054_v21  ;;  %4614 = vmatpush3.msra.mxu1 %v4035_v22 }
 0x6d1   : > { %4655 = vmatprep.subr.mxu0 %v4712_v10  ;;  %4615 = vmatprep.mubr.msk.f32.mxu1 %vm4715_vm3, %v4712_v10 }
 0x6d2   : > { %4618 = vmatprep.subr.mxu1 %v4712_v10  ;;  %4656 = vmatpush3.msra.mxu0 %v4053_v23 }
 0x6d3   : > { %4657 = vmatprep.mubr.msk.f32.mxu0 %vm4715_vm3, %v4712_v10  ;;  %4616 = vmatmul.mubr.msk.f32.vlgmr.msra.gmra.mxu1 %vm1362_vm1, %v2948_v18 }
 0x6d4   : > { %4619 = vmatpush3.msra.mxu1 %v4039_v24  ;;  %4658 = vmatmul.mubr.msk.f32.vlgmr.msra.gmra.mxu0 %vm1362_vm1, %v2948_v18 }
 0x6d5   : > { %4620 = vmatprep.subr.mxu1 %v4712_v10  ;;  %4622 = vmatprep.mubr.msk.f32.mxu1 %vm4715_vm3, %v4712_v10 }
 0x6d6   : > { %4621 = vmatpush3.msra.mxu1 %v4038_v25 }
 0x6d7   : > { %4632 = vmatprep.subr.mxu1 %v4712_v10  ;;  %4623 = vmatmul.mubr.msk.f32.vlgmr.msra.gmra.mxu1 %vm1362_vm1, %v2948_v18 }
 0x6d8   : > { %4633 = vmatpush3.msra.mxu1 %v4045_v26  ;;  %4636 = vmatprep.mubr.msk.f32.mxu1 %vm4715_vm3, %v4712_v10 }
 0x6d9   : > { %4634 = vmatprep.subr.mxu1 %v4712_v10 }
 0x6da   : > { %4635 = vmatpush3.msra.mxu1 %v4044_v27 }
 0x6db   : > { %4646 = vmatprep.subr.mxu1 %v4712_v10  ;;  %4637 = vmatmul.mubr.msk.f32.vlgmr.msra.gmra.mxu1 %vm1362_vm1, %v2948_v18 }
 0x6dc   : > { %4647 = vmatpush3.msra.mxu1 %v4051_v28  ;;  %4650 = vmatprep.mubr.msk.f32.mxu1 %vm4715_vm3, %v4712_v10 }
 0x6dd   : > { %4648 = vmatprep.subr.mxu1 %v4712_v10 }
 0x6de   : > { %4649 = vmatpush3.msra.mxu1 %v4050_v29 }
 0x6df   : > { %4651 = vmatmul.mubr.msk.f32.vlgmr.msra.gmra.mxu1 %vm1362_vm1, %v2948_v18  ;;  %4660 = vmatprep.subr.mxu1 %v4712_v10 }
 0x6e0   : > { %4670 = vmatprep.mubr.msk.f32.mxu1 %vm4715_vm3, %v4712_v10 }
 0x788   : > { %v3017_v30 = vpop.f32.mrf.mxu1  ;;  %v3309_v31 = vpop.f32.mrf.mxu0 }
 0x78a   : > { %v4603_v32 = vpop.f32.mrf.mxu1  ;;  %v4631_v33 = vpop.f32.mrf.mxu0 }
 0x78d   : > { %v3090_v34 = vpop.f32.mrf.mxu1 }
 0x78e   : > { %v3455_v35 = vpop.f32.mrf.mxu0  ;;  %v3606_v54 = vrot.slane %v3090_v34, 4 }
 0x78f   : > { %v4610_v37 = vpop.f32.mrf.mxu1 }
 0x790   : > { %v4645_v38 = vpop.f32.mrf.mxu0  ;;  %v3617_v59 = vsel %vm1469_vm4, %v3017_v30, %v3606_v54 }
 0x793   : > { %v3163_v39 = vpop.f32.mrf.mxu1 }
 0x794   : > { %v3601_v40 = vpop.f32.mrf.mxu0 }
 0x795   : > { %4661 = vmatpush3.msk.msra.mxu1 %vm1469_vm4, %v3601_v40  ;;  %v4617_v41 = vpop.f32.mrf.mxu1 }
 0x796   : > { %v4659_v42 = vpop.f32.mrf.mxu0  ;;  %4662 = vmatprep.subr.mxu1 %v4712_v10 }
 0x797   : > { %v3236_v44 = vpop.f32.mrf.mxu1 }
 0x798   : > { %v3609_v51 = vrot.slane %v3236_v44, 4 }
 0x799   : > { %v4624_v46 = vpop.f32.mrf.mxu1 }
 0x79a   : > { %v3618_v57 = vsel %vm1469_vm4, %v3163_v39, %v3609_v51 }
 0x79b   : > { %v3382_v43 = vpop.f32.mrf.mxu1 }
 0x79c   : > { %v3612_v49 = vrot.slane %v3382_v43, 4 }
 0x79d   : > { %v4638_v47 = vpop.f32.mrf.mxu1 }
 0x79e   : > { %v3619_v55 = vsel %vm1469_vm4, %v3309_v31, %v3612_v49 }
 0x79f   : > { %v3528_v48 = vpop.f32.mrf.mxu1 }
 0x7a0   : > { %v3615_v50 = vrot.slane %v3528_v48, 4 }
 0x7a1   : > { %v4652_v45 = vpop.f32.mrf.mxu1 }
 0x7a2   : > { %v3620_v52 = vsel %vm1469_vm4, %v3455_v35, %v3615_v50 }
 0x7a3   : > { %4663 = vmatpush3.msra.mxu1 %v3620_v52 }
 0x7a4   : > { %4664 = vmatprep.subr.mxu1 %v4712_v10 }
 0x7a5   : > { %4665 = vmatpush3.msra.mxu1 %v3619_v55 }
 0x7a6   : > { %4666 = vmatprep.subr.mxu1 %v4712_v10 }
 0x7a7   : > { %4667 = vmatpush3.msra.mxu1 %v3618_v57 }
 0x7a8   : > { %4668 = vmatprep.subr.mxu1 %v4712_v10 }
 0x7a9   : > { %4669 = vmatpush3.msra.mxu1 %v3617_v59 }
 0x7aa   : > { %4671 = vmatmul.mubr.msk.f32.vlgmr.msra.gmra.mxu1 %vm3621_vm7, %v2944_v58 }
 0x86a   : > { %v3694_v60 = vpop.f32.mrf.mxu1 }
 0x86b   : > { %v3698_v61 = vsel %vm1436_vm2, %v3694_v60, 0.0 }
 0x86c   : > { %3699 = vadd.xlane.f32.xlu1 %v3698_v61  ;;  %v4672_v62 = vpop.f32.mrf.mxu1 }
 0x8f5   : > { %v3700_v63 = vpop.xlane.xlu1 %3699 }
 0x8f6   : > { %v3701_v0 = vmul.f32 0.0625, %v3700_v63 }
 0x8f8   : > { %v3702_v36 = vsub.f32 %v3694_v60, %v3701_v0 }
 0x8fa   : > { %v3703_v1 = vmul.f32 %v3702_v36, %v3702_v36 }
 0x8fc   : > { %v3704_v2 = vsel %vm1436_vm2, %v3703_v1, 0.0 }
 0x8fd   : > { %3705 = vadd.xlane.f32.xlu1 %v3704_v2 }
 0x90e   : > { %3733 = vperm.xlu1 %4689, %v5287_v11  }
 0x986   : > { %v3706_v10 = vpop.xlane.xlu1 %3705 }
 0x987   : > { %v3707_v3 = vmul.f32 0.0625, %v3706_v10 }
 0x989   : > { %v3708_v4 = vadd.f32 1e-05, %v3707_v3 }
 0x98a   : > { %v3734_v12 = vpop.permute.xlu1 %3733 }
 0x98b   : > { %4700 = vrsqrt.f32 %v3708_v4 }
 0x998   : > { %v4701_v7 = vpop.eup %4700 }
 0x999   : > { %v3710_v8 = vmul.f32 %v4701_v7, %v3702_v36 }
 0x99b   : > { %v3718_v13 = vmul.f32 %v3716_v6, %v3710_v8  ;;  %v3731_v14 = vmul.f32 %v3729_v5, %v3710_v8 }
 0x99d   : > { %v3723_v15 = vadd.f32 %v3721_v9, %v3718_v13  ;;  %v3736_v16 = vadd.f32 %v3734_v12, %v3731_v14 }
 0x99f   : > { %v3724_v11 = vmax.f32 %v3723_v15, 0.0  ;;  %4702 = vtanh.f32 %v3736_v16 }
 0x9a1   : > { %3725 = vst.msk [vmem:[%s590_s0] sm:$0xf] %vm1436_vm2, %v3724_v11 }
 0x9ac   : > { %v4703_v18 = vpop.eup %4702 }
 0x9ad   : > { %v3738_v19 = vmax.f32 %v4703_v18, -10.0 }
 0x9af   : > { %v3739_v17 = vmin.f32 %v3738_v19, 2.0 }
 0x9b1   : > { %3740 = vst.msk [vmem:[%s594_s20] sm:$0xf] %vm1436_vm2, %v3739_v17 }
 0x9b2 PF: > { %s28_s24 = sadd.s32 1, %s4710_s24  }
 0x9b3   : > { %p25_p4 = scmp.ge.s32.totalorder %s28_s24, 4  }
 0x9b5   :  { %27 = sbr.rel (!%p25_p4) target bundleno = 3 (0x3), region = 169 }

</bundles_post_ra>
